<compile_context>
chip_gen: v7x
topology: tpu7x:2x2x1
jax: 0.10.0
libtpu: 0.0.40
codegen_flags: <defaults>
</compile_context>

<pallas_src>
from functools import partial

import jax
import jax.numpy as jnp
from jax.experimental import pallas as pl
from jax.experimental.pallas import tpu as pltpu

# ----------------------------- model hyper-params (small) -----------------------------
B = 2            # batch
S = 8            # sequence length
H = 128          # hidden size (stands in for 768)
NH = 4           # attention heads
D = H // NH      # head dim
FFN = 256        # intermediate size (must be 2*H for the packed-bias layout below)
VOCAB = 100
TYPE_VOCAB = 2
MAX_POS = 32
N_LAYERS = 2
N_CLASSES = 2

assert FFN == 2 * H, "packed-bias layout assumes FFN == 2*H"

# rows of the packed per-layer small-parameter slab `pvec` (each row is width H)
ROW_BQ, ROW_BK, ROW_BV = 0, 1, 2
ROW_BO = 3
ROW_B1_LO, ROW_B1_HI = 4, 5          # FFN bias split into two H-wide halves
ROW_B2 = 6
ROW_LN1G, ROW_LN1B = 7, 8
ROW_LN2G, ROW_LN2B = 9, 10
N_SMALL = 11


# ----------------------------- in-kernel helpers -----------------------------
def _layernorm(x, g, b, eps=1e-12):
    mu = jnp.mean(x, axis=-1, keepdims=True)
    var = jnp.mean((x - mu) ** 2, axis=-1, keepdims=True)
    return (x - mu) * jax.lax.rsqrt(var + eps) * g + b


# ----------------------------- fused encoder kernel -----------------------------
def _encoder_kernel(
        # layer-invariant inputs
        x_emb_ref, mask_ref, embln_ref, fcw_ref, fcb_ref,
        # per-layer (stacked) inputs — double-buffered across the layer grid
        w_in_ref, w2_ref, pv_ref,
        # output
        probs_ref,
        # scratch: activation resident in VMEM across layers
        x_scr,
        *, n_heads):
    li = pl.program_id(0)
    n_layers = pl.num_programs(0)

    bsz, seq = mask_ref.shape
    hid = x_scr.shape[-1]
    hd = hid // n_heads
    scale = 1.0 / (hd ** 0.5)

    # ---- step 0: embedding LayerNorm, seed the VMEM-resident activation ----
    @pl.when(li == 0)
    def _init():
        x_scr[...] = _layernorm(x_emb_ref[...].astype(jnp.float32),
                                embln_ref[0:1, :], embln_ref[1:2, :])

    x = x_scr[...]                                             # (B*S, H) f32
    pv = pv_ref[...]                                           # (N_SMALL, H) f32
    w_in = w_in_ref[...]                                       # (H, 3H+H+FFN) bf16

    # ---- fused QKV projection (bf16 MXU, f32 accumulate); lane-aligned slices ----
    qkv = jnp.dot(x.astype(jnp.bfloat16), w_in[:, :3 * hid],
                  preferred_element_type=jnp.float32)          # (B*S, 3H)
    q = qkv[:, :hid] + pv[ROW_BQ:ROW_BQ + 1, :]
    k = qkv[:, hid:2 * hid] + pv[ROW_BK:ROW_BK + 1, :]
    v = qkv[:, 2 * hid:3 * hid] + pv[ROW_BV:ROW_BV + 1, :]

    mask = mask_ref[...]                                       # (B, S) additive bias

    # ---- attention: head split / softmax / merge all inside the kernel ----
    ctx_rows = []
    for b in range(bsz):
        qb = q[b * seq:(b + 1) * seq, :]                       # (S, H)
        kb = k[b * seq:(b + 1) * seq, :]
        vb = v[b * seq:(b + 1) * seq, :]
        mb = mask[b:b + 1, :]                                  # (1, S) key bias
        heads = []
        for h in range(n_heads):
            qh = qb[:, h * hd:(h + 1) * hd]                    # (S, D)
            kh = kb[:, h * hd:(h + 1) * hd]
            vh = vb[:, h * hd:(h + 1) * hd]
            # q @ k^T without an explicit transpose
            s = jax.lax.dot_general(qh, kh, (((1,), (1,)), ((), ())),
                                    preferred_element_type=jnp.float32) * scale
            s = s + mb
            s = s - jnp.max(s, axis=-1, keepdims=True)
            p = jnp.exp(s)
            p = p * pl.reciprocal(jnp.sum(p, axis=-1, keepdims=True), approx=True)
            heads.append(jnp.dot(p, vh, preferred_element_type=jnp.float32))
        ctx_rows.append(jnp.concatenate(heads, axis=-1))       # (S, H)
    ctx = jnp.concatenate(ctx_rows, axis=0)                    # (B*S, H)

    # ---- output projection + residual + LayerNorm ----
    wo = w_in[:, 3 * hid:4 * hid]
    attn_out = jnp.dot(ctx.astype(jnp.bfloat16), wo,
                       preferred_element_type=jnp.float32) + pv[ROW_BO:ROW_BO + 1, :]
    x = _layernorm(x + attn_out, pv[ROW_LN1G:ROW_LN1G + 1, :], pv[ROW_LN1B:ROW_LN1B + 1, :])

    # ---- FFN + residual + LayerNorm ----
    w1 = w_in[:, 4 * hid:]
    b1 = jnp.concatenate([pv[ROW_B1_LO:ROW_B1_LO + 1, :],
                          pv[ROW_B1_HI:ROW_B1_HI + 1, :]], axis=-1)      # (1, FFN)
    hdn = jnp.dot(x.astype(jnp.bfloat16), w1,
                  preferred_element_type=jnp.float32) + b1
    # tanh-approximate GELU (EUP); original BERT uses erf-GELU — negligible here
    hdn = jax.nn.gelu(hdn)
    ffn_out = jnp.dot(hdn.astype(jnp.bfloat16), w2_ref[...],
                      preferred_element_type=jnp.float32) + pv[ROW_B2:ROW_B2 + 1, :]
    x = _layernorm(x + ffn_out, pv[ROW_LN2G:ROW_LN2G + 1, :], pv[ROW_LN2B:ROW_LN2B + 1, :])

    x_scr[...] = x

    # ---- last layer: CLS head (fc + softmax over classes), fused in ----
    @pl.when(li == n_layers - 1)
    def _head():
        cls = jnp.concatenate([x[b * seq:b * seq + 1, :] for b in range(bsz)],
                              axis=0)                          # (B, H)
        logits = jnp.dot(cls, fcw_ref[...],
                         preferred_element_type=jnp.float32) + fcb_ref[...]
        logits = logits - jnp.max(logits, axis=-1, keepdims=True)
        e = jnp.exp(logits)
        # exact division here so the class probabilities sum to 1 tightly
        probs_ref[...] = (e / jnp.sum(e, axis=-1, keepdims=True)).astype(probs_ref.dtype)


def fused_bert_forward(x_emb, mask_bias, p):
    bsz = mask_bias.shape[0]
    n_cls = p["fc_w"].shape[1]
    n_layers = p["w_in"].shape[0]

    def const(arr):
        nd = arr.ndim
        return pl.BlockSpec(arr.shape, lambda i, _n=nd: (0,) * _n)

    def per_layer(arr):
        nd = arr.ndim
        return pl.BlockSpec((None,) + arr.shape[1:],
                            lambda i, _n=nd: (i,) + (0,) * (_n - 1))

    args = (x_emb, mask_bias, p["emb_ln"], p["fc_w"], p["fc_b"],
            p["w_in"], p["w2"], p["pvec"])

    in_specs = ([const(a) for a in args[:5]]
                + [per_layer(p["w_in"]), per_layer(p["w2"]), per_layer(p["pvec"])])

    grid_spec = pltpu.PrefetchScalarGridSpec(
        num_scalar_prefetch=0,
        grid=(n_layers,),
        in_specs=in_specs,
        out_specs=pl.BlockSpec((bsz, n_cls), lambda i: (0, 0)),
        scratch_shapes=[pltpu.VMEM(x_emb.shape, jnp.float32)],
    )

    return pl.pallas_call(
        partial(_encoder_kernel, n_heads=NH),
        out_shape=jax.ShapeDtypeStruct((bsz, n_cls), jnp.float32),
        grid_spec=grid_spec,
        compiler_params=pltpu.CompilerParams(
            dimension_semantics=("arbitrary",)),   # sequential layer carry
    )(*args)


# ----------------------------- parameter init (deterministic) -----------------------------
def init_params(key):
    def nrm(k, shape, scale=0.02):
        return scale * jax.random.normal(k, shape, dtype=jnp.float32)

    keys = jax.random.split(key, 4 + N_LAYERS)
    params = {
        "word_emb": nrm(keys[0], (VOCAB, H)),
        "pos_emb": nrm(keys[1], (MAX_POS, H)),
        "type_emb": nrm(keys[2], (TYPE_VOCAB, H)),
        # packed embedding LayerNorm: row 0 = gamma, row 1 = beta
        "emb_ln": jnp.stack([jnp.ones((H,), jnp.float32),
                             jnp.zeros((H,), jnp.float32)], axis=0),     # (2, H)
        "fc_w": nrm(keys[3], (H, N_CLASSES)),
        "fc_b": jnp.zeros((1, N_CLASSES), jnp.float32),
    }

    w_in, w2, pvec = [], [], []
    for li in range(N_LAYERS):
        lk = jax.random.split(keys[4 + li], 6)
        wq = nrm(lk[0], (H, H))
        wk = nrm(lk[1], (H, H))
        wv = nrm(lk[2], (H, H))
        wo = nrm(lk[3], (H, H))
        w1 = nrm(lk[4], (H, FFN))
        # fused input-side weight slab: Wq | Wk | Wv | Wo | W1  -> (H, 3H+H+FFN)
        w_in.append(jnp.concatenate([wq, wk, wv, wo, w1], axis=1))
        w2.append(nrm(lk[5], (FFN, H)))
        # packed small params: biases zero, LayerNorm gammas = 1, betas = 0
        rows = jnp.zeros((N_SMALL, H), jnp.float32)
        rows = rows.at[ROW_LN1G].set(1.0).at[ROW_LN2G].set(1.0)
        pvec.append(rows)

    # MXU-facing weights in bf16 (halves DMA/VMEM traffic; f32 accumulate in kernel)
    params["w_in"] = jnp.stack(w_in).astype(jnp.bfloat16)   # [L, H, 3H+H+FFN]
    params["w2"] = jnp.stack(w2).astype(jnp.bfloat16)       # [L, FFN, H]
    # biases / LN params stay f32 (elementwise math kept in f32 on all generations)
    params["pvec"] = jnp.stack(pvec)                        # [L, N_SMALL, H]
    return params


# ----------------------------- forward pass -----------------------------
@jax.jit
def model_forward(params, input_ids, attention_mask, token_type_ids):
    b, s = input_ids.shape
    # embeddings (table gathers are glue in plain JAX)
    emb = (jnp.take(params["word_emb"], input_ids, axis=0)
           + params["pos_emb"][None, :s, :]
           + jnp.take(params["type_emb"], token_type_ids, axis=0))
    x_emb = emb.reshape(b * s, H)
    mask_bias = (1.0 - attention_mask.astype(jnp.float32)) * (-1e9)      # [B, S]
    # single fused kernel: emb-LN -> N_LAYERS transformer layers -> fc + softmax
    return fused_bert_forward(x_emb, mask_bias, params)


# ----------------------------- main -----------------------------
if __name__ == "__main__":
    key = jax.random.PRNGKey(0)
    pkey, ikey, mkey, tkey = jax.random.split(key, 4)

    params = init_params(pkey)

    input_ids = jax.random.randint(ikey, (B, S), 0, VOCAB, dtype=jnp.int32)
    attention_mask = jnp.ones((B, S), dtype=jnp.int32)
    # simulate sentence-pair token type ids: second half of sequence is segment 1
    token_type_ids = jnp.concatenate(
        [jnp.zeros((B, S // 2), jnp.int32), jnp.ones((B, S - S // 2), jnp.int32)], axis=1)

    out = model_forward(params, input_ids, attention_mask, token_type_ids)
    out = jax.block_until_ready(out)

    assert out.shape == (B, N_CLASSES)
    assert bool(jnp.allclose(jnp.sum(out, axis=1), 1.0, atol=1e-5))
    print("KERNEL_OK")
</pallas_src>

<mosaic_0001>
module attributes {stable_mosaic.version = 11 : i64} {
  func.func @_encoder_kernel(%arg0: i32, %arg1: memref<16x128xf32, #tpu.memory_space<vmem>>, %arg2: memref<2x8xf32, #tpu.memory_space<vmem>>, %arg3: memref<2x128xf32, #tpu.memory_space<vmem>>, %arg4: memref<128x2xf32, #tpu.memory_space<vmem>>, %arg5: memref<1x2xf32, #tpu.memory_space<vmem>>, %arg6: memref<1x128x768xbf16, #tpu.memory_space<vmem>>, %arg7: memref<1x256x128xbf16, #tpu.memory_space<vmem>>, %arg8: memref<1x11x128xf32, #tpu.memory_space<vmem>>, %arg9: memref<2x2xf32, #tpu.memory_space<vmem>>, %arg10: memref<16x128xf32, #tpu.memory_space<vmem>>) attributes {dimension_semantics = [#tpu.dimension_semantics<arbitrary>], iteration_bounds = array<i64: 2>, scalar_prefetch = 0 : i64, scratch_operands = 1 : i64, tpu.core_type = #tpu.core_type<tc>, window_params = [{pipeline_mode = #tpu.pipeline_mode<synchronous>, transform_indices = @transform_0, window_bounds = array<i64: 16, 128>}, {pipeline_mode = #tpu.pipeline_mode<synchronous>, transform_indices = @transform_1, window_bounds = array<i64: 2, 8>}, {pipeline_mode = #tpu.pipeline_mode<synchronous>, transform_indices = @transform_2, window_bounds = array<i64: 2, 128>}, {pipeline_mode = #tpu.pipeline_mode<synchronous>, transform_indices = @transform_3, window_bounds = array<i64: 128, 2>}, {pipeline_mode = #tpu.pipeline_mode<synchronous>, transform_indices = @transform_4, window_bounds = array<i64: 1, 2>}, {transform_indices = @transform_5, window_bounds = array<i64: 1, 128, 768>}, {transform_indices = @transform_6, window_bounds = array<i64: 1, 256, 128>}, {transform_indices = @transform_7, window_bounds = array<i64: 1, 11, 128>}, {pipeline_mode = #tpu.pipeline_mode<synchronous>, transform_indices = @transform_8, window_bounds = array<i64: 2, 2>}]} {
    %c0_i32 = arith.constant 0 : i32
    %0 = arith.cmpi eq, %arg0, %c0_i32 : i32
    %1 = arith.extui %0 : i1 to i32
    %c0_i32_0 = arith.constant 0 : i32
    %2 = arith.cmpi ne, %1, %c0_i32_0 : i32
    scf.if %2 {
      %c0_73 = arith.constant 0 : index
      %c0_74 = arith.constant 0 : index
      %275 = vector.load %arg1[%c0_73, %c0_74] : memref<16x128xf32, #tpu.memory_space<vmem>>, vector<16x128xf32>
      %c0_75 = arith.constant 0 : index
      %c0_76 = arith.constant 0 : index
      %276 = vector.load %arg3[%c0_75, %c0_76] : memref<2x128xf32, #tpu.memory_space<vmem>>, vector<1x128xf32>
      %c1 = arith.constant 1 : index
      %c0_77 = arith.constant 0 : index
      %277 = vector.load %arg3[%c1, %c0_77] : memref<2x128xf32, #tpu.memory_space<vmem>>, vector<1x128xf32>
      %cst_78 = arith.constant dense<0.000000e+00> : vector<16xf32>
      %278 = vector.multi_reduction <add>, %275, %cst_78 [1] : vector<16x128xf32> to vector<16xf32>
      %279 = vector.shape_cast %278 : vector<16xf32> to vector<16x1xf32>
      %cst_79 = arith.constant 1.280000e+02 : f32
      %280 = vector.broadcast %cst_79 : f32 to vector<16x1xf32>
      %281 = arith.divf %279, %280 : vector<16x1xf32>
      %282 = vector.broadcast %281 : vector<16x1xf32> to vector<16x128xf32>
      %283 = arith.subf %275, %282 : vector<16x128xf32>
      %284 = arith.mulf %283, %283 : vector<16x128xf32>
      %cst_80 = arith.constant dense<0.000000e+00> : vector<16xf32>
      %285 = vector.multi_reduction <add>, %284, %cst_80 [1] : vector<16x128xf32> to vector<16xf32>
      %286 = vector.shape_cast %285 : vector<16xf32> to vector<16x1xf32>
      %cst_81 = arith.constant 1.280000e+02 : f32
      %287 = vector.broadcast %cst_81 : f32 to vector<16x1xf32>
      %288 = arith.divf %286, %287 : vector<16x1xf32>
      %289 = vector.broadcast %281 : vector<16x1xf32> to vector<16x128xf32>
      %290 = arith.subf %275, %289 : vector<16x128xf32>
      %cst_82 = arith.constant 9.99999996E-13 : f32
      %291 = vector.broadcast %cst_82 : f32 to vector<16x1xf32>
      %292 = arith.addf %288, %291 : vector<16x1xf32>
      %293 = math.rsqrt %292 : vector<16x1xf32>
      %294 = vector.broadcast %293 : vector<16x1xf32> to vector<16x128xf32>
      %295 = arith.mulf %290, %294 : vector<16x128xf32>
      %296 = vector.broadcast %276 : vector<1x128xf32> to vector<16x128xf32>
      %297 = arith.mulf %295, %296 : vector<16x128xf32>
      %298 = vector.broadcast %277 : vector<1x128xf32> to vector<16x128xf32>
      %299 = arith.addf %297, %298 : vector<16x128xf32>
      %c0_83 = arith.constant 0 : index
      %c0_84 = arith.constant 0 : index
      %300 = vector.load %arg10[%c0_83, %c0_84] : memref<16x128xf32, #tpu.memory_space<vmem>>, vector<16x128xf32>
      tpu.vector_store %arg10[%c0_83, %c0_84], %299 {strides = array<i32>} : memref<16x128xf32, #tpu.memory_space<vmem>>, vector<16x128xf32>,
    } else {
    }
    %c0 = arith.constant 0 : index
    %c0_1 = arith.constant 0 : index
    %3 = vector.load %arg10[%c0, %c0_1] : memref<16x128xf32, #tpu.memory_space<vmem>>, vector<16x128xf32>
    %c0_2 = arith.constant 0 : index
    %c0_3 = arith.constant 0 : index
    %c0_4 = arith.constant 0 : index
    %4 = vector.load %arg8[%c0_2, %c0_3, %c0_4] : memref<1x11x128xf32, #tpu.memory_space<vmem>>, vector<1x11x128xf32>
    %5 = vector.shape_cast %4 : vector<1x11x128xf32> to vector<11x128xf32>
    %c0_5 = arith.constant 0 : index
    %c0_6 = arith.constant 0 : index
    %c0_7 = arith.constant 0 : index
    %6 = vector.load %arg6[%c0_5, %c0_6, %c0_7] : memref<1x128x768xbf16, #tpu.memory_space<vmem>>, vector<1x128x768xbf16>
    %7 = vector.shape_cast %6 : vector<1x128x768xbf16> to vector<128x768xbf16>
    %8 = arith.truncf %3 : vector<16x128xf32> to vector<16x128xbf16>
    %9 = vector.extract_strided_slice %7 {offsets = [0, 0], sizes = [128, 384], strides = [1, 1]} : vector<128x768xbf16> to vector<128x384xbf16>
    %cst = arith.constant dense<0.000000e+00> : vector<16x384xf32>
    %10 = tpu.matmul %8, %9, %cst {dimension_numbers = #tpu.dot_dimension_numbers<[1], [0], [0], [1], [0, 0, 1, 1], [], []>} : vector<16x128xbf16>, vector<128x384xbf16>, vector<16x384xf32> -> vector<16x384xf32>
    %11 = vector.extract_strided_slice %10 {offsets = [0, 0], sizes = [16, 128], strides = [1, 1]} : vector<16x384xf32> to vector<16x128xf32>
    %12 = vector.extract_strided_slice %5 {offsets = [0, 0], sizes = [1, 128], strides = [1, 1]} : vector<11x128xf32> to vector<1x128xf32>
    %13 = vector.broadcast %12 : vector<1x128xf32> to vector<16x128xf32>
    %14 = arith.addf %11, %13 : vector<16x128xf32>
    %15 = vector.extract_strided_slice %10 {offsets = [0, 128], sizes = [16, 128], strides = [1, 1]} : vector<16x384xf32> to vector<16x128xf32>
    %16 = vector.extract_strided_slice %5 {offsets = [1, 0], sizes = [1, 128], strides = [1, 1]} : vector<11x128xf32> to vector<1x128xf32>
    %17 = vector.broadcast %16 : vector<1x128xf32> to vector<16x128xf32>
    %18 = arith.addf %15, %17 : vector<16x128xf32>
    %19 = vector.extract_strided_slice %10 {offsets = [0, 256], sizes = [16, 128], strides = [1, 1]} : vector<16x384xf32> to vector<16x128xf32>
    %20 = vector.extract_strided_slice %5 {offsets = [2, 0], sizes = [1, 128], strides = [1, 1]} : vector<11x128xf32> to vector<1x128xf32>
    %21 = vector.broadcast %20 : vector<1x128xf32> to vector<16x128xf32>
    %22 = arith.addf %19, %21 : vector<16x128xf32>
    %c0_8 = arith.constant 0 : index
    %c0_9 = arith.constant 0 : index
    %23 = vector.load %arg2[%c0_8, %c0_9] : memref<2x8xf32, #tpu.memory_space<vmem>>, vector<2x8xf32>
    %24 = vector.extract_strided_slice %14 {offsets = [0, 0], sizes = [8, 128], strides = [1, 1]} : vector<16x128xf32> to vector<8x128xf32>
    %25 = vector.extract_strided_slice %18 {offsets = [0, 0], sizes = [8, 128], strides = [1, 1]} : vector<16x128xf32> to vector<8x128xf32>
    %26 = vector.extract_strided_slice %22 {offsets = [0, 0], sizes = [8, 128], strides = [1, 1]} : vector<16x128xf32> to vector<8x128xf32>
    %27 = vector.extract_strided_slice %23 {offsets = [0, 0], sizes = [1, 8], strides = [1, 1]} : vector<2x8xf32> to vector<1x8xf32>
    %28 = vector.extract_strided_slice %24 {offsets = [0, 0], sizes = [8, 32], strides = [1, 1]} : vector<8x128xf32> to vector<8x32xf32>
    %29 = vector.extract_strided_slice %25 {offsets = [0, 0], sizes = [8, 32], strides = [1, 1]} : vector<8x128xf32> to vector<8x32xf32>
    %30 = vector.extract_strided_slice %26 {offsets = [0, 0], sizes = [8, 32], strides = [1, 1]} : vector<8x128xf32> to vector<8x32xf32>
    %cst_10 = arith.constant dense<0.000000e+00> : vector<8x8xf32>
    %31 = tpu.matmul %28, %29, %cst_10 {dimension_numbers = #tpu.dot_dimension_numbers<[1], [1], [0], [0], [0, 0, 1, 0], [], []>} : vector<8x32xf32>, vector<8x32xf32>, vector<8x8xf32> -> vector<8x8xf32>
    %cst_11 = arith.constant 0.176776692 : f32
    %32 = vector.broadcast %cst_11 : f32 to vector<8x8xf32>
    %33 = arith.mulf %31, %32 : vector<8x8xf32>
    %34 = vector.broadcast %27 : vector<1x8xf32> to vector<8x8xf32>
    %35 = arith.addf %33, %34 : vector<8x8xf32>
    %cst_12 = arith.constant dense<0xFF800000> : vector<8xf32>
    %36 = vector.multi_reduction <maximumf>, %35, %cst_12 [1] : vector<8x8xf32> to vector<8xf32>
    %37 = vector.shape_cast %36 : vector<8xf32> to vector<8x1xf32>
    %38 = vector.broadcast %37 : vector<8x1xf32> to vector<8x8xf32>
    %39 = arith.subf %35, %38 : vector<8x8xf32>
    %40 = math.exp %39 : vector<8x8xf32>
    %cst_13 = arith.constant dense<0.000000e+00> : vector<8xf32>
    %41 = vector.multi_reduction <add>, %40, %cst_13 [1] : vector<8x8xf32> to vector<8xf32>
    %42 = vector.shape_cast %41 : vector<8xf32> to vector<8x1xf32>
    %43 = tpu.reciprocal %42 {approx = true} : vector<8x1xf32> -> vector<8x1xf32>
    %44 = vector.broadcast %43 : vector<8x1xf32> to vector<8x8xf32>
    %45 = arith.mulf %40, %44 : vector<8x8xf32>
    %cst_14 = arith.constant dense<0.000000e+00> : vector<8x32xf32>
    %46 = tpu.matmul %45, %30, %cst_14 {dimension_numbers = #tpu.dot_dimension_numbers<[1], [0], [0], [1], [0, 0, 1, 1], [], []>} : vector<8x8xf32>, vector<8x32xf32>, vector<8x32xf32> -> vector<8x32xf32>
    %47 = vector.extract_strided_slice %24 {offsets = [0, 32], sizes = [8, 32], strides = [1, 1]} : vector<8x128xf32> to vector<8x32xf32>
    %48 = vector.extract_strided_slice %25 {offsets = [0, 32], sizes = [8, 32], strides = [1, 1]} : vector<8x128xf32> to vector<8x32xf32>
    %49 = vector.extract_strided_slice %26 {offsets = [0, 32], sizes = [8, 32], strides = [1, 1]} : vector<8x128xf32> to vector<8x32xf32>
    %cst_15 = arith.constant dense<0.000000e+00> : vector<8x8xf32>
    %50 = tpu.matmul %47, %48, %cst_15 {dimension_numbers = #tpu.dot_dimension_numbers<[1], [1], [0], [0], [0, 0, 1, 0], [], []>} : vector<8x32xf32>, vector<8x32xf32>, vector<8x8xf32> -> vector<8x8xf32>
    %cst_16 = arith.constant 0.176776692 : f32
    %51 = vector.broadcast %cst_16 : f32 to vector<8x8xf32>
    %52 = arith.mulf %50, %51 : vector<8x8xf32>
    %53 = vector.broadcast %27 : vector<1x8xf32> to vector<8x8xf32>
    %54 = arith.addf %52, %53 : vector<8x8xf32>
    %cst_17 = arith.constant dense<0xFF800000> : vector<8xf32>
    %55 = vector.multi_reduction <maximumf>, %54, %cst_17 [1] : vector<8x8xf32> to vector<8xf32>
    %56 = vector.shape_cast %55 : vector<8xf32> to vector<8x1xf32>
    %57 = vector.broadcast %56 : vector<8x1xf32> to vector<8x8xf32>
    %58 = arith.subf %54, %57 : vector<8x8xf32>
    %59 = math.exp %58 : vector<8x8xf32>
    %cst_18 = arith.constant dense<0.000000e+00> : vector<8xf32>
    %60 = vector.multi_reduction <add>, %59, %cst_18 [1] : vector<8x8xf32> to vector<8xf32>
    %61 = vector.shape_cast %60 : vector<8xf32> to vector<8x1xf32>
    %62 = tpu.reciprocal %61 {approx = true} : vector<8x1xf32> -> vector<8x1xf32>
    %63 = vector.broadcast %62 : vector<8x1xf32> to vector<8x8xf32>
    %64 = arith.mulf %59, %63 : vector<8x8xf32>
    %cst_19 = arith.constant dense<0.000000e+00> : vector<8x32xf32>
    %65 = tpu.matmul %64, %49, %cst_19 {dimension_numbers = #tpu.dot_dimension_numbers<[1], [0], [0], [1], [0, 0, 1, 1], [], []>} : vector<8x8xf32>, vector<8x32xf32>, vector<8x32xf32> -> vector<8x32xf32>
    %66 = vector.extract_strided_slice %24 {offsets = [0, 64], sizes = [8, 32], strides = [1, 1]} : vector<8x128xf32> to vector<8x32xf32>
    %67 = vector.extract_strided_slice %25 {offsets = [0, 64], sizes = [8, 32], strides = [1, 1]} : vector<8x128xf32> to vector<8x32xf32>
    %68 = vector.extract_strided_slice %26 {offsets = [0, 64], sizes = [8, 32], strides = [1, 1]} : vector<8x128xf32> to vector<8x32xf32>
    %cst_20 = arith.constant dense<0.000000e+00> : vector<8x8xf32>
    %69 = tpu.matmul %66, %67, %cst_20 {dimension_numbers = #tpu.dot_dimension_numbers<[1], [1], [0], [0], [0, 0, 1, 0], [], []>} : vector<8x32xf32>, vector<8x32xf32>, vector<8x8xf32> -> vector<8x8xf32>
    %cst_21 = arith.constant 0.176776692 : f32
    %70 = vector.broadcast %cst_21 : f32 to vector<8x8xf32>
    %71 = arith.mulf %69, %70 : vector<8x8xf32>
    %72 = vector.broadcast %27 : vector<1x8xf32> to vector<8x8xf32>
    %73 = arith.addf %71, %72 : vector<8x8xf32>
    %cst_22 = arith.constant dense<0xFF800000> : vector<8xf32>
    %74 = vector.multi_reduction <maximumf>, %73, %cst_22 [1] : vector<8x8xf32> to vector<8xf32>
    %75 = vector.shape_cast %74 : vector<8xf32> to vector<8x1xf32>
    %76 = vector.broadcast %75 : vector<8x1xf32> to vector<8x8xf32>
    %77 = arith.subf %73, %76 : vector<8x8xf32>
    %78 = math.exp %77 : vector<8x8xf32>
    %cst_23 = arith.constant dense<0.000000e+00> : vector<8xf32>
    %79 = vector.multi_reduction <add>, %78, %cst_23 [1] : vector<8x8xf32> to vector<8xf32>
    %80 = vector.shape_cast %79 : vector<8xf32> to vector<8x1xf32>
    %81 = tpu.reciprocal %80 {approx = true} : vector<8x1xf32> -> vector<8x1xf32>
    %82 = vector.broadcast %81 : vector<8x1xf32> to vector<8x8xf32>
    %83 = arith.mulf %78, %82 : vector<8x8xf32>
    %cst_24 = arith.constant dense<0.000000e+00> : vector<8x32xf32>
    %84 = tpu.matmul %83, %68, %cst_24 {dimension_numbers = #tpu.dot_dimension_numbers<[1], [0], [0], [1], [0, 0, 1, 1], [], []>} : vector<8x8xf32>, vector<8x32xf32>, vector<8x32xf32> -> vector<8x32xf32>
    %85 = vector.extract_strided_slice %24 {offsets = [0, 96], sizes = [8, 32], strides = [1, 1]} : vector<8x128xf32> to vector<8x32xf32>
    %86 = vector.extract_strided_slice %25 {offsets = [0, 96], sizes = [8, 32], strides = [1, 1]} : vector<8x128xf32> to vector<8x32xf32>
    %87 = vector.extract_strided_slice %26 {offsets = [0, 96], sizes = [8, 32], strides = [1, 1]} : vector<8x128xf32> to vector<8x32xf32>
    %cst_25 = arith.constant dense<0.000000e+00> : vector<8x8xf32>
    %88 = tpu.matmul %85, %86, %cst_25 {dimension_numbers = #tpu.dot_dimension_numbers<[1], [1], [0], [0], [0, 0, 1, 0], [], []>} : vector<8x32xf32>, vector<8x32xf32>, vector<8x8xf32> -> vector<8x8xf32>
    %cst_26 = arith.constant 0.176776692 : f32
    %89 = vector.broadcast %cst_26 : f32 to vector<8x8xf32>
    %90 = arith.mulf %88, %89 : vector<8x8xf32>
    %91 = vector.broadcast %27 : vector<1x8xf32> to vector<8x8xf32>
    %92 = arith.addf %90, %91 : vector<8x8xf32>
    %cst_27 = arith.constant dense<0xFF800000> : vector<8xf32>
    %93 = vector.multi_reduction <maximumf>, %92, %cst_27 [1] : vector<8x8xf32> to vector<8xf32>
    %94 = vector.shape_cast %93 : vector<8xf32> to vector<8x1xf32>
    %95 = vector.broadcast %94 : vector<8x1xf32> to vector<8x8xf32>
    %96 = arith.subf %92, %95 : vector<8x8xf32>
    %97 = math.exp %96 : vector<8x8xf32>
    %cst_28 = arith.constant dense<0.000000e+00> : vector<8xf32>
    %98 = vector.multi_reduction <add>, %97, %cst_28 [1] : vector<8x8xf32> to vector<8xf32>
    %99 = vector.shape_cast %98 : vector<8xf32> to vector<8x1xf32>
    %100 = tpu.reciprocal %99 {approx = true} : vector<8x1xf32> -> vector<8x1xf32>
    %101 = vector.broadcast %100 : vector<8x1xf32> to vector<8x8xf32>
    %102 = arith.mulf %97, %101 : vector<8x8xf32>
    %cst_29 = arith.constant dense<0.000000e+00> : vector<8x32xf32>
    %103 = tpu.matmul %102, %87, %cst_29 {dimension_numbers = #tpu.dot_dimension_numbers<[1], [0], [0], [1], [0, 0, 1, 1], [], []>} : vector<8x8xf32>, vector<8x32xf32>, vector<8x32xf32> -> vector<8x32xf32>
    %104 = tpu.concatenate %46, %65, %84, %103 in 1 : vector<8x32xf32>, vector<8x32xf32>, vector<8x32xf32>, vector<8x32xf32> -> vector<8x128xf32>
    %105 = vector.extract_strided_slice %14 {offsets = [8, 0], sizes = [8, 128], strides = [1, 1]} : vector<16x128xf32> to vector<8x128xf32>
    %106 = vector.extract_strided_slice %18 {offsets = [8, 0], sizes = [8, 128], strides = [1, 1]} : vector<16x128xf32> to vector<8x128xf32>
    %107 = vector.extract_strided_slice %22 {offsets = [8, 0], sizes = [8, 128], strides = [1, 1]} : vector<16x128xf32> to vector<8x128xf32>
    %108 = vector.extract_strided_slice %23 {offsets = [1, 0], sizes = [1, 8], strides = [1, 1]} : vector<2x8xf32> to vector<1x8xf32>
    %109 = vector.extract_strided_slice %105 {offsets = [0, 0], sizes = [8, 32], strides = [1, 1]} : vector<8x128xf32> to vector<8x32xf32>
    %110 = vector.extract_strided_slice %106 {offsets = [0, 0], sizes = [8, 32], strides = [1, 1]} : vector<8x128xf32> to vector<8x32xf32>
    %111 = vector.extract_strided_slice %107 {offsets = [0, 0], sizes = [8, 32], strides = [1, 1]} : vector<8x128xf32> to vector<8x32xf32>
    %cst_30 = arith.constant dense<0.000000e+00> : vector<8x8xf32>
    %112 = tpu.matmul %109, %110, %cst_30 {dimension_numbers = #tpu.dot_dimension_numbers<[1], [1], [0], [0], [0, 0, 1, 0], [], []>} : vector<8x32xf32>, vector<8x32xf32>, vector<8x8xf32> -> vector<8x8xf32>
    %cst_31 = arith.constant 0.176776692 : f32
    %113 = vector.broadcast %cst_31 : f32 to vector<8x8xf32>
    %114 = arith.mulf %112, %113 : vector<8x8xf32>
    %115 = vector.broadcast %108 : vector<1x8xf32> to vector<8x8xf32>
    %116 = arith.addf %114, %115 : vector<8x8xf32>
    %cst_32 = arith.constant dense<0xFF800000> : vector<8xf32>
    %117 = vector.multi_reduction <maximumf>, %116, %cst_32 [1] : vector<8x8xf32> to vector<8xf32>
    %118 = vector.shape_cast %117 : vector<8xf32> to vector<8x1xf32>
    %119 = vector.broadcast %118 : vector<8x1xf32> to vector<8x8xf32>
    %120 = arith.subf %116, %119 : vector<8x8xf32>
    %121 = math.exp %120 : vector<8x8xf32>
    %cst_33 = arith.constant dense<0.000000e+00> : vector<8xf32>
    %122 = vector.multi_reduction <add>, %121, %cst_33 [1] : vector<8x8xf32> to vector<8xf32>
    %123 = vector.shape_cast %122 : vector<8xf32> to vector<8x1xf32>
    %124 = tpu.reciprocal %123 {approx = true} : vector<8x1xf32> -> vector<8x1xf32>
    %125 = vector.broadcast %124 : vector<8x1xf32> to vector<8x8xf32>
    %126 = arith.mulf %121, %125 : vector<8x8xf32>
    %cst_34 = arith.constant dense<0.000000e+00> : vector<8x32xf32>
    %127 = tpu.matmul %126, %111, %cst_34 {dimension_numbers = #tpu.dot_dimension_numbers<[1], [0], [0], [1], [0, 0, 1, 1], [], []>} : vector<8x8xf32>, vector<8x32xf32>, vector<8x32xf32> -> vector<8x32xf32>
    %128 = vector.extract_strided_slice %105 {offsets = [0, 32], sizes = [8, 32], strides = [1, 1]} : vector<8x128xf32> to vector<8x32xf32>
    %129 = vector.extract_strided_slice %106 {offsets = [0, 32], sizes = [8, 32], strides = [1, 1]} : vector<8x128xf32> to vector<8x32xf32>
    %130 = vector.extract_strided_slice %107 {offsets = [0, 32], sizes = [8, 32], strides = [1, 1]} : vector<8x128xf32> to vector<8x32xf32>
    %cst_35 = arith.constant dense<0.000000e+00> : vector<8x8xf32>
    %131 = tpu.matmul %128, %129, %cst_35 {dimension_numbers = #tpu.dot_dimension_numbers<[1], [1], [0], [0], [0, 0, 1, 0], [], []>} : vector<8x32xf32>, vector<8x32xf32>, vector<8x8xf32> -> vector<8x8xf32>
    %cst_36 = arith.constant 0.176776692 : f32
    %132 = vector.broadcast %cst_36 : f32 to vector<8x8xf32>
    %133 = arith.mulf %131, %132 : vector<8x8xf32>
    %134 = vector.broadcast %108 : vector<1x8xf32> to vector<8x8xf32>
    %135 = arith.addf %133, %134 : vector<8x8xf32>
    %cst_37 = arith.constant dense<0xFF800000> : vector<8xf32>
    %136 = vector.multi_reduction <maximumf>, %135, %cst_37 [1] : vector<8x8xf32> to vector<8xf32>
    %137 = vector.shape_cast %136 : vector<8xf32> to vector<8x1xf32>
    %138 = vector.broadcast %137 : vector<8x1xf32> to vector<8x8xf32>
    %139 = arith.subf %135, %138 : vector<8x8xf32>
    %140 = math.exp %139 : vector<8x8xf32>
    %cst_38 = arith.constant dense<0.000000e+00> : vector<8xf32>
    %141 = vector.multi_reduction <add>, %140, %cst_38 [1] : vector<8x8xf32> to vector<8xf32>
    %142 = vector.shape_cast %141 : vector<8xf32> to vector<8x1xf32>
    %143 = tpu.reciprocal %142 {approx = true} : vector<8x1xf32> -> vector<8x1xf32>
    %144 = vector.broadcast %143 : vector<8x1xf32> to vector<8x8xf32>
    %145 = arith.mulf %140, %144 : vector<8x8xf32>
    %cst_39 = arith.constant dense<0.000000e+00> : vector<8x32xf32>
    %146 = tpu.matmul %145, %130, %cst_39 {dimension_numbers = #tpu.dot_dimension_numbers<[1], [0], [0], [1], [0, 0, 1, 1], [], []>} : vector<8x8xf32>, vector<8x32xf32>, vector<8x32xf32> -> vector<8x32xf32>
    %147 = vector.extract_strided_slice %105 {offsets = [0, 64], sizes = [8, 32], strides = [1, 1]} : vector<8x128xf32> to vector<8x32xf32>
    %148 = vector.extract_strided_slice %106 {offsets = [0, 64], sizes = [8, 32], strides = [1, 1]} : vector<8x128xf32> to vector<8x32xf32>
    %149 = vector.extract_strided_slice %107 {offsets = [0, 64], sizes = [8, 32], strides = [1, 1]} : vector<8x128xf32> to vector<8x32xf32>
    %cst_40 = arith.constant dense<0.000000e+00> : vector<8x8xf32>
    %150 = tpu.matmul %147, %148, %cst_40 {dimension_numbers = #tpu.dot_dimension_numbers<[1], [1], [0], [0], [0, 0, 1, 0], [], []>} : vector<8x32xf32>, vector<8x32xf32>, vector<8x8xf32> -> vector<8x8xf32>
    %cst_41 = arith.constant 0.176776692 : f32
    %151 = vector.broadcast %cst_41 : f32 to vector<8x8xf32>
    %152 = arith.mulf %150, %151 : vector<8x8xf32>
    %153 = vector.broadcast %108 : vector<1x8xf32> to vector<8x8xf32>
    %154 = arith.addf %152, %153 : vector<8x8xf32>
    %cst_42 = arith.constant dense<0xFF800000> : vector<8xf32>
    %155 = vector.multi_reduction <maximumf>, %154, %cst_42 [1] : vector<8x8xf32> to vector<8xf32>
    %156 = vector.shape_cast %155 : vector<8xf32> to vector<8x1xf32>
    %157 = vector.broadcast %156 : vector<8x1xf32> to vector<8x8xf32>
    %158 = arith.subf %154, %157 : vector<8x8xf32>
    %159 = math.exp %158 : vector<8x8xf32>
    %cst_43 = arith.constant dense<0.000000e+00> : vector<8xf32>
    %160 = vector.multi_reduction <add>, %159, %cst_43 [1] : vector<8x8xf32> to vector<8xf32>
    %161 = vector.shape_cast %160 : vector<8xf32> to vector<8x1xf32>
    %162 = tpu.reciprocal %161 {approx = true} : vector<8x1xf32> -> vector<8x1xf32>
    %163 = vector.broadcast %162 : vector<8x1xf32> to vector<8x8xf32>
    %164 = arith.mulf %159, %163 : vector<8x8xf32>
    %cst_44 = arith.constant dense<0.000000e+00> : vector<8x32xf32>
    %165 = tpu.matmul %164, %149, %cst_44 {dimension_numbers = #tpu.dot_dimension_numbers<[1], [0], [0], [1], [0, 0, 1, 1], [], []>} : vector<8x8xf32>, vector<8x32xf32>, vector<8x32xf32> -> vector<8x32xf32>
    %166 = vector.extract_strided_slice %105 {offsets = [0, 96], sizes = [8, 32], strides = [1, 1]} : vector<8x128xf32> to vector<8x32xf32>
    %167 = vector.extract_strided_slice %106 {offsets = [0, 96], sizes = [8, 32], strides = [1, 1]} : vector<8x128xf32> to vector<8x32xf32>
    %168 = vector.extract_strided_slice %107 {offsets = [0, 96], sizes = [8, 32], strides = [1, 1]} : vector<8x128xf32> to vector<8x32xf32>
    %cst_45 = arith.constant dense<0.000000e+00> : vector<8x8xf32>
    %169 = tpu.matmul %166, %167, %cst_45 {dimension_numbers = #tpu.dot_dimension_numbers<[1], [1], [0], [0], [0, 0, 1, 0], [], []>} : vector<8x32xf32>, vector<8x32xf32>, vector<8x8xf32> -> vector<8x8xf32>
    %cst_46 = arith.constant 0.176776692 : f32
    %170 = vector.broadcast %cst_46 : f32 to vector<8x8xf32>
    %171 = arith.mulf %169, %170 : vector<8x8xf32>
    %172 = vector.broadcast %108 : vector<1x8xf32> to vector<8x8xf32>
    %173 = arith.addf %171, %172 : vector<8x8xf32>
    %cst_47 = arith.constant dense<0xFF800000> : vector<8xf32>
    %174 = vector.multi_reduction <maximumf>, %173, %cst_47 [1] : vector<8x8xf32> to vector<8xf32>
    %175 = vector.shape_cast %174 : vector<8xf32> to vector<8x1xf32>
    %176 = vector.broadcast %175 : vector<8x1xf32> to vector<8x8xf32>
    %177 = arith.subf %173, %176 : vector<8x8xf32>
    %178 = math.exp %177 : vector<8x8xf32>
    %cst_48 = arith.constant dense<0.000000e+00> : vector<8xf32>
    %179 = vector.multi_reduction <add>, %178, %cst_48 [1] : vector<8x8xf32> to vector<8xf32>
    %180 = vector.shape_cast %179 : vector<8xf32> to vector<8x1xf32>
    %181 = tpu.reciprocal %180 {approx = true} : vector<8x1xf32> -> vector<8x1xf32>
    %182 = vector.broadcast %181 : vector<8x1xf32> to vector<8x8xf32>
    %183 = arith.mulf %178, %182 : vector<8x8xf32>
    %cst_49 = arith.constant dense<0.000000e+00> : vector<8x32xf32>
    %184 = tpu.matmul %183, %168, %cst_49 {dimension_numbers = #tpu.dot_dimension_numbers<[1], [0], [0], [1], [0, 0, 1, 1], [], []>} : vector<8x8xf32>, vector<8x32xf32>, vector<8x32xf32> -> vector<8x32xf32>
    %185 = tpu.concatenate %127, %146, %165, %184 in 1 : vector<8x32xf32>, vector<8x32xf32>, vector<8x32xf32>, vector<8x32xf32> -> vector<8x128xf32>
    %186 = tpu.concatenate %104, %185 in 0 : vector<8x128xf32>, vector<8x128xf32> -> vector<16x128xf32>
    %187 = vector.extract_strided_slice %7 {offsets = [0, 384], sizes = [128, 128], strides = [1, 1]} : vector<128x768xbf16> to vector<128x128xbf16>
    %188 = arith.truncf %186 : vector<16x128xf32> to vector<16x128xbf16>
    %cst_50 = arith.constant dense<0.000000e+00> : vector<16x128xf32>
    %189 = tpu.matmul %188, %187, %cst_50 {dimension_numbers = #tpu.dot_dimension_numbers<[1], [0], [0], [1], [0, 0, 1, 1], [], []>} : vector<16x128xbf16>, vector<128x128xbf16>, vector<16x128xf32> -> vector<16x128xf32>
    %190 = vector.extract_strided_slice %5 {offsets = [3, 0], sizes = [1, 128], strides = [1, 1]} : vector<11x128xf32> to vector<1x128xf32>
    %191 = vector.broadcast %190 : vector<1x128xf32> to vector<16x128xf32>
    %192 = arith.addf %189, %191 : vector<16x128xf32>
    %193 = arith.addf %3, %192 : vector<16x128xf32>
    %194 = vector.extract_strided_slice %5 {offsets = [7, 0], sizes = [1, 128], strides = [1, 1]} : vector<11x128xf32> to vector<1x128xf32>
    %195 = vector.extract_strided_slice %5 {offsets = [8, 0], sizes = [1, 128], strides = [1, 1]} : vector<11x128xf32> to vector<1x128xf32>
    %cst_51 = arith.constant dense<0.000000e+00> : vector<16xf32>
    %196 = vector.multi_reduction <add>, %193, %cst_51 [1] : vector<16x128xf32> to vector<16xf32>
    %197 = vector.shape_cast %196 : vector<16xf32> to vector<16x1xf32>
    %cst_52 = arith.constant 1.280000e+02 : f32
    %198 = vector.broadcast %cst_52 : f32 to vector<16x1xf32>
    %199 = arith.divf %197, %198 : vector<16x1xf32>
    %200 = vector.broadcast %199 : vector<16x1xf32> to vector<16x128xf32>
    %201 = arith.subf %193, %200 : vector<16x128xf32>
    %202 = arith.mulf %201, %201 : vector<16x128xf32>
    %cst_53 = arith.constant dense<0.000000e+00> : vector<16xf32>
    %203 = vector.multi_reduction <add>, %202, %cst_53 [1] : vector<16x128xf32> to vector<16xf32>
    %204 = vector.shape_cast %203 : vector<16xf32> to vector<16x1xf32>
    %cst_54 = arith.constant 1.280000e+02 : f32
    %205 = vector.broadcast %cst_54 : f32 to vector<16x1xf32>
    %206 = arith.divf %204, %205 : vector<16x1xf32>
    %207 = vector.broadcast %199 : vector<16x1xf32> to vector<16x128xf32>
    %208 = arith.subf %193, %207 : vector<16x128xf32>
    %cst_55 = arith.constant 9.99999996E-13 : f32
    %209 = vector.broadcast %cst_55 : f32 to vector<16x1xf32>
    %210 = arith.addf %206, %209 : vector<16x1xf32>
    %211 = math.rsqrt %210 : vector<16x1xf32>
    %212 = vector.broadcast %211 : vector<16x1xf32> to vector<16x128xf32>
    %213 = arith.mulf %208, %212 : vector<16x128xf32>
    %214 = vector.broadcast %194 : vector<1x128xf32> to vector<16x128xf32>
    %215 = arith.mulf %213, %214 : vector<16x128xf32>
    %216 = vector.broadcast %195 : vector<1x128xf32> to vector<16x128xf32>
    %217 = arith.addf %215, %216 : vector<16x128xf32>
    %218 = vector.extract_strided_slice %7 {offsets = [0, 512], sizes = [128, 256], strides = [1, 1]} : vector<128x768xbf16> to vector<128x256xbf16>
    %219 = vector.extract_strided_slice %5 {offsets = [4, 0], sizes = [1, 128], strides = [1, 1]} : vector<11x128xf32> to vector<1x128xf32>
    %220 = vector.extract_strided_slice %5 {offsets = [5, 0], sizes = [1, 128], strides = [1, 1]} : vector<11x128xf32> to vector<1x128xf32>
    %221 = tpu.concatenate %219, %220 in 1 : vector<1x128xf32>, vector<1x128xf32> -> vector<1x256xf32>
    %222 = arith.truncf %217 : vector<16x128xf32> to vector<16x128xbf16>
    %cst_56 = arith.constant dense<0.000000e+00> : vector<16x256xf32>
    %223 = tpu.matmul %222, %218, %cst_56 {dimension_numbers = #tpu.dot_dimension_numbers<[1], [0], [0], [1], [0, 0, 1, 1], [], []>} : vector<16x128xbf16>, vector<128x256xbf16>, vector<16x256xf32> -> vector<16x256xf32>
    %224 = vector.broadcast %221 : vector<1x256xf32> to vector<16x256xf32>
    %225 = arith.addf %223, %224 : vector<16x256xf32>
    %226 = arith.mulf %225, %225 : vector<16x256xf32>
    %227 = arith.mulf %225, %226 : vector<16x256xf32>
    %cst_57 = arith.constant 4.471500e-02 : f32
    %228 = vector.broadcast %cst_57 : f32 to vector<16x256xf32>
    %229 = arith.mulf %228, %227 : vector<16x256xf32>
    %230 = arith.addf %225, %229 : vector<16x256xf32>
    %cst_58 = arith.constant 0.797884583 : f32
    %231 = vector.broadcast %cst_58 : f32 to vector<16x256xf32>
    %232 = arith.mulf %231, %230 : vector<16x256xf32>
    %233 = math.tanh %232 : vector<16x256xf32>
    %cst_59 = arith.constant 1.000000e+00 : f32
    %234 = vector.broadcast %cst_59 : f32 to vector<16x256xf32>
    %235 = arith.addf %234, %233 : vector<16x256xf32>
    %cst_60 = arith.constant 5.000000e-01 : f32
    %236 = vector.broadcast %cst_60 : f32 to vector<16x256xf32>
    %237 = arith.mulf %236, %235 : vector<16x256xf32>
    %238 = arith.mulf %225, %237 : vector<16x256xf32>
    %239 = arith.truncf %238 : vector<16x256xf32> to vector<16x256xbf16>
    %c0_61 = arith.constant 0 : index
    %c0_62 = arith.constant 0 : index
    %c0_63 = arith.constant 0 : index
    %240 = vector.load %arg7[%c0_61, %c0_62, %c0_63] : memref<1x256x128xbf16, #tpu.memory_space<vmem>>, vector<1x256x128xbf16>
    %241 = vector.shape_cast %240 : vector<1x256x128xbf16> to vector<256x128xbf16>
    %cst_64 = arith.constant dense<0.000000e+00> : vector<16x128xf32>
    %242 = tpu.matmul %239, %241, %cst_64 {dimension_numbers = #tpu.dot_dimension_numbers<[1], [0], [0], [1], [0, 0, 1, 1], [], []>} : vector<16x256xbf16>, vector<256x128xbf16>, vector<16x128xf32> -> vector<16x128xf32>
    %243 = vector.extract_strided_slice %5 {offsets = [6, 0], sizes = [1, 128], strides = [1, 1]} : vector<11x128xf32> to vector<1x128xf32>
    %244 = vector.broadcast %243 : vector<1x128xf32> to vector<16x128xf32>
    %245 = arith.addf %242, %244 : vector<16x128xf32>
    %246 = arith.addf %217, %245 : vector<16x128xf32>
    %247 = vector.extract_strided_slice %5 {offsets = [9, 0], sizes = [1, 128], strides = [1, 1]} : vector<11x128xf32> to vector<1x128xf32>
    %248 = vector.extract_strided_slice %5 {offsets = [10, 0], sizes = [1, 128], strides = [1, 1]} : vector<11x128xf32> to vector<1x128xf32>
    %cst_65 = arith.constant dense<0.000000e+00> : vector<16xf32>
    %249 = vector.multi_reduction <add>, %246, %cst_65 [1] : vector<16x128xf32> to vector<16xf32>
    %250 = vector.shape_cast %249 : vector<16xf32> to vector<16x1xf32>
    %cst_66 = arith.constant 1.280000e+02 : f32
    %251 = vector.broadcast %cst_66 : f32 to vector<16x1xf32>
    %252 = arith.divf %250, %251 : vector<16x1xf32>
    %253 = vector.broadcast %252 : vector<16x1xf32> to vector<16x128xf32>
    %254 = arith.subf %246, %253 : vector<16x128xf32>
    %255 = arith.mulf %254, %254 : vector<16x128xf32>
    %cst_67 = arith.constant dense<0.000000e+00> : vector<16xf32>
    %256 = vector.multi_reduction <add>, %255, %cst_67 [1] : vector<16x128xf32> to vector<16xf32>
    %257 = vector.shape_cast %256 : vector<16xf32> to vector<16x1xf32>
    %cst_68 = arith.constant 1.280000e+02 : f32
    %258 = vector.broadcast %cst_68 : f32 to vector<16x1xf32>
    %259 = arith.divf %257, %258 : vector<16x1xf32>
    %260 = vector.broadcast %252 : vector<16x1xf32> to vector<16x128xf32>
    %261 = arith.subf %246, %260 : vector<16x128xf32>
    %cst_69 = arith.constant 9.99999996E-13 : f32
    %262 = vector.broadcast %cst_69 : f32 to vector<16x1xf32>
    %263 = arith.addf %259, %262 : vector<16x1xf32>
    %264 = math.rsqrt %263 : vector<16x1xf32>
    %265 = vector.broadcast %264 : vector<16x1xf32> to vector<16x128xf32>
    %266 = arith.mulf %261, %265 : vector<16x128xf32>
    %267 = vector.broadcast %247 : vector<1x128xf32> to vector<16x128xf32>
    %268 = arith.mulf %266, %267 : vector<16x128xf32>
    %269 = vector.broadcast %248 : vector<1x128xf32> to vector<16x128xf32>
    %270 = arith.addf %268, %269 : vector<16x128xf32>
    %c0_70 = arith.constant 0 : index
    %c0_71 = arith.constant 0 : index
    %271 = vector.load %arg10[%c0_70, %c0_71] : memref<16x128xf32, #tpu.memory_space<vmem>>, vector<16x128xf32>
    tpu.vector_store %arg10[%c0_70, %c0_71], %270 {strides = array<i32>} : memref<16x128xf32, #tpu.memory_space<vmem>>, vector<16x128xf32>,
    %c1_i32 = arith.constant 1 : i32
    %272 = arith.cmpi eq, %arg0, %c1_i32 : i32
    %273 = arith.extui %272 : i1 to i32
    %c0_i32_72 = arith.constant 0 : i32
    %274 = arith.cmpi ne, %273, %c0_i32_72 : i32
    scf.if %274 {
      %275 = vector.extract_strided_slice %270 {offsets = [0, 0], sizes = [1, 128], strides = [1, 1]} : vector<16x128xf32> to vector<1x128xf32>
      %276 = vector.extract_strided_slice %270 {offsets = [8, 0], sizes = [1, 128], strides = [1, 1]} : vector<16x128xf32> to vector<1x128xf32>
      %277 = tpu.concatenate %275, %276 in 0 : vector<1x128xf32>, vector<1x128xf32> -> vector<2x128xf32>
      %c0_73 = arith.constant 0 : index
      %c0_74 = arith.constant 0 : index
      %278 = vector.load %arg4[%c0_73, %c0_74] : memref<128x2xf32, #tpu.memory_space<vmem>>, vector<128x2xf32>
      %cst_75 = arith.constant dense<0.000000e+00> : vector<2x2xf32>
      %279 = tpu.matmul %277, %278, %cst_75 {dimension_numbers = #tpu.dot_dimension_numbers<[1], [0], [0], [1], [0, 0, 1, 1], [], []>} : vector<2x128xf32>, vector<128x2xf32>, vector<2x2xf32> -> vector<2x2xf32>
      %c0_76 = arith.constant 0 : index
      %c0_77 = arith.constant 0 : index
      %280 = vector.load %arg5[%c0_76, %c0_77] : memref<1x2xf32, #tpu.memory_space<vmem>>, vector<1x2xf32>
      %281 = vector.broadcast %280 : vector<1x2xf32> to vector<2x2xf32>
      %282 = arith.addf %279, %281 : vector<2x2xf32>
      %cst_78 = arith.constant dense<0xFF800000> : vector<2xf32>
      %283 = vector.multi_reduction <maximumf>, %282, %cst_78 [1] : vector<2x2xf32> to vector<2xf32>
      %284 = vector.shape_cast %283 : vector<2xf32> to vector<2x1xf32>
      %285 = vector.broadcast %284 : vector<2x1xf32> to vector<2x2xf32>
      %286 = arith.subf %282, %285 : vector<2x2xf32>
      %287 = math.exp %286 : vector<2x2xf32>
      %cst_79 = arith.constant dense<0.000000e+00> : vector<2xf32>
      %288 = vector.multi_reduction <add>, %287, %cst_79 [1] : vector<2x2xf32> to vector<2xf32>
      %289 = vector.shape_cast %288 : vector<2xf32> to vector<2x1xf32>
      %290 = vector.broadcast %289 : vector<2x1xf32> to vector<2x2xf32>
      %291 = arith.divf %287, %290 : vector<2x2xf32>
      %c0_80 = arith.constant 0 : index
      %c0_81 = arith.constant 0 : index
      %292 = vector.load %arg9[%c0_80, %c0_81] : memref<2x2xf32, #tpu.memory_space<vmem>>, vector<2x2xf32>
      tpu.vector_store %arg9[%c0_80, %c0_81], %291 {strides = array<i32>} : memref<2x2xf32, #tpu.memory_space<vmem>>, vector<2x2xf32>,
    } else {
    }
    return
  }
  func.func @transform_0(%arg0: i32) -> (i32, i32) {
    %c0_i32 = arith.constant 0 : i32
    %c0_i32_0 = arith.constant 0 : i32
    %c0_i32_1 = arith.constant 0 : i32
    return %c0_i32, %c0_i32_0 : i32, i32
  }
  func.func @transform_1(%arg0: i32) -> (i32, i32) {
    %c0_i32 = arith.constant 0 : i32
    %c0_i32_0 = arith.constant 0 : i32
    %c0_i32_1 = arith.constant 0 : i32
    return %c0_i32, %c0_i32_0 : i32, i32
  }
  func.func @transform_2(%arg0: i32) -> (i32, i32) {
    %c0_i32 = arith.constant 0 : i32
    %c0_i32_0 = arith.constant 0 : i32
    %c0_i32_1 = arith.constant 0 : i32
    return %c0_i32, %c0_i32_0 : i32, i32
  }
  func.func @transform_3(%arg0: i32) -> (i32, i32) {
    %c0_i32 = arith.constant 0 : i32
    %c0_i32_0 = arith.constant 0 : i32
    %c0_i32_1 = arith.constant 0 : i32
    return %c0_i32, %c0_i32_0 : i32, i32
  }
  func.func @transform_4(%arg0: i32) -> (i32, i32) {
    %c0_i32 = arith.constant 0 : i32
    %c0_i32_0 = arith.constant 0 : i32
    %c0_i32_1 = arith.constant 0 : i32
    return %c0_i32, %c0_i32_0 : i32, i32
  }
  func.func @transform_5(%arg0: i32) -> (i32, i32, i32) {
    %c0_i32 = arith.constant 0 : i32
    %c0_i32_0 = arith.constant 0 : i32
    %c0_i32_1 = arith.constant 0 : i32
    return %arg0, %c0_i32, %c0_i32_0 : i32, i32, i32
  }
  func.func @transform_6(%arg0: i32) -> (i32, i32, i32) {
    %c0_i32 = arith.constant 0 : i32
    %c0_i32_0 = arith.constant 0 : i32
    %c0_i32_1 = arith.constant 0 : i32
    return %arg0, %c0_i32, %c0_i32_0 : i32, i32, i32
  }
  func.func @transform_7(%arg0: i32) -> (i32, i32, i32) {
    %c0_i32 = arith.constant 0 : i32
    %c0_i32_0 = arith.constant 0 : i32
    %c0_i32_1 = arith.constant 0 : i32
    return %arg0, %c0_i32, %c0_i32_0 : i32, i32, i32
  }
  func.func @transform_8(%arg0: i32) -> (i32, i32) {
    %c0_i32 = arith.constant 0 : i32
    %c0_i32_0 = arith.constant 0 : i32
    %c0_i32_1 = arith.constant 0 : i32
    return %c0_i32, %c0_i32_0 : i32, i32
  }
}

</mosaic_0001>

<bundles_post_ra>
// kernel: model_forward.1
= control target key start
LH: loop header
LB: loop body
LE: loop exit
PB: predicated region body
PF: predicated region fallthrough
CT: control target
= control target key end

     0   :  { %13 = vsyncpa [#allocation4], 0  ;;  %s4029_s0 = inlined_call_operand.vmem [shape: f32[16,128], index: 0, kind: input, shape index: {}]   ;;  %s4030_s1 = inlined_call_operand.vmem [shape: f32[2,8], index: 1, kind: input, shape index: {}]   ;;  %s4031_s2 = inlined_call_operand.vmem [shape: f32[2,128], index: 2, kind: input, shape index: {}]   ;;  %s4032_s3 = inlined_call_operand.vmem [shape: f32[128,2], index: 3, kind: input, shape index: {}]   ;;  %s4033_s4 = inlined_call_operand.vmem [shape: f32[1,2], index: 4, kind: input, shape index: {}]   ;;  %s4034_s5 = inlined_call_operand.hbm [shape: bf16[2,128,768], index: 5, kind: input, shape index: {}]   ;;  %s4035_s6 = inlined_call_operand.vmem [shape: bf16[2,256,128], index: 6, kind: input, shape index: {}]   ;;  %s4036_s7 = inlined_call_operand.vmem [shape: f32[2,11,128], index: 7, kind: input, shape index: {}]   ;;  %s4037_s8 = inlined_call_operand.hbm [shape: f32[2,2], index: 8, kind: output, shape index: {}]  }
   0x1   :  { %15 = vsyncpa [#allocation4 + $0x1], 0 }
   0x2   :  { %16 = vsyncpa [#allocation5], 0  ;;  %s3497_s27 = smov 0   ;;  %s3499_s28 = smov 0  }
   0x3   :  { %s3501_s29 = smov 0   ;;  %s3503_s30 = smov 0  }
   0x4 LB: > { %s3516_s9 = sadd.s32 4294967295, %s3437_s30   ;;  %s3519_s10 = sadd.s32 1, %s3437_s30   ;;  %s3437_s30 = sphi %s3503_s30, %s4044_s30   ;;  %s3433_s29 = sphi %s3501_s29, %s4043_s29   ;;  %s3429_s28 = sphi %s3499_s28, %s4042_s28   ;;  %s3425_s27 = sphi %s3497_s27, %s4041_s27  }
   0x5   : > { %s131_s11 = ssub.s32 %s3437_s30, %s3519_s10  ;;  %s134_s12 = sadd.s32 1, %s3433_s29 }
   0x6   : > { %p132_p0 = scmp.eq.s32.totalorder %s131_s11, 0  ;;  %p141_p1 = scmp.ne.s32.totalorder %s3433_s29, %s3429_s28 }
   0x7   : > { %p142_p2 = scmp.eq.s32.totalorder %s3437_s30, 0  ;;  %p147_p3 = scmp.ne.s32.totalorder %s3429_s28, %s3425_s27 }
   0x8   : > { %s3529_s13 = scalar_select %p132_p0, %s3433_s29, %s134_s12  }
   0x9   : > { %p143_p4 = por %p142_p2, %p141_p1  ;;  %p148_p5 = scmp.eq.s32.totalorder %s3516_s9, 0 }
   0xa   : > { %p3136_p6 = scmp.lt.s32.totalorder %s3437_s30, 2  ;;  %s259_s15 = sand.u32 1, %s3433_s29  }
   0xb   : > { %p3533_p7 = por %p148_p5, %p147_p3  ;;  %s3123_s16 = smul.u32 384, %s259_s15 }
   0xc   : > { %s3124_s17 = smul.u32 6144, %s3437_s30  ;;  %p3539_p8 = pnand %p3136_p6, %p143_p4 }
   0xd   : > { %s263_s22 = scalar_lea.vmem [#allocation3], %s3123_s16  ;;  %s3551_s24 = scalar_lea.sflag [#allocation4], %s259_s15 }
   0xe   : > { %s3546_s21 = scalar_lea.hbm %s4034_s5, %s3124_s17  ;;  %s270_s23 = sshll.u32 %s263_s22, 4  ;;  %s3548_s23 = int_to_ptr.vmem [resolvable:$true] %s270_s23 }
   0xf   : > { %s3343_s25 = scalar_lea.hbm %s3546_s21, 6144  ;;  %p3345_p11 = pneg %p3539_p8 }
  0x10   : > { %p3344_p10 = scmp.ne.s32.totalorder %s3546_s21, %s3343_s25  ;;  %s3348_s11 = scalar_lea.hbm %s4034_s5, 12288 }
  0x11   : > { %p3349_p0 = scmp.lt.u32.totalorder %s3546_s21, %s4034_s5  ;;  %p3350_p1 = scmp.lt.u32.totalorder %s3348_s11, %s3343_s25 }
  0x12   : > { %p3346_p12 = pnand %p3345_p11, %p3344_p10  ;;  %p3352_p3 = scmp.lt.u32.totalorder %s3343_s25, %s3546_s21 }
  0x13   : > { %p3351_p2 = por %p3350_p1, %p3349_p0 }
  0x14   : > { %p3347_p13 = pneg %p3346_p12 }
  0x15   : > { %p3353_p4 = por %p3352_p3, %p3351_p2 }
  0x17   : > { %p3354_p5 = pnand %p3353_p4, %p3347_p13 }
  0x19   : > { %3357 = shalt.err (!%p3354_p5)
}
  0x1a   : > { %s3358_s15 = scalar_lea.vmem %s3548_s23, 6144  ;;  %s3439_s17 = smov [#allocation3]  }
  0x1b   : > { %p3359_p6 = scmp.ne.s32.totalorder %s3548_s23, %s3358_s15  ;;  %s3363_s19 = sshll.u32 %s3439_s17, 4  ;;  %s3364_s19 = int_to_ptr.vmem [resolvable:$false] %s3363_s19 }
  0x1c   : > { %s3365_s20 = scalar_lea.vmem %s3364_s19, 12288  ;;  %p3366_p9 = scmp.lt.s32.totalorder %s3548_s23, %s3364_s19 }
  0x1d   : > { %p3361_p10 = pnand %p3359_p6, %p3345_p11  ;;  %p3367_p0 = scmp.lt.s32.totalorder %s3365_s20, %s3358_s15 }
  0x1f   : > { %p3362_p12 = pneg %p3361_p10  ;;  %p3368_p1 = por %p3367_p0, %p3366_p9 }
  0x21   : > { %p3369_p2 = pnand %p3368_p1, %p3362_p12 }
  0x23   : > { %3372 = shalt.err (!%p3369_p2)
}
  0x24   : > { %s3440_s22 = smov 384   ;;  %s3441_s25 = smov 24  }
  0x25   : > { %3135 = dma.hbm_to_vmem [thread:$0]  (!%p3539_p8), %s3546_s21, 6144, %s3548_s23, %s3551_s24, %s3440_s22, %s3440_s22, %s3441_s25  }
  0x26   : > { %p294_p11 = scmp.lt.s32.totalorder %s3437_s30, 3  ;;  %p4040_p13 = scmp.ge.s32.totalorder %s3437_s30, 1 }
  0x28   : > { %p295_p3 = pnand %p4040_p13, %p294_p11 }
  0x29   : > { %s300_s26 = sand.u32 (!%p295_p3), 1, %s3429_s28  }
  0x2a   : > { %298 = sbr.rel (%p295_p3) target bundleno = 5000 (0x1388), region = 52  ;;  %s301_s11 = scalar_lea.sflag (!%p295_p3), [#allocation4], %s300_s26 }
  0x2b   : > { %s3125_s27 = smul.u32 (!%p295_p3), 384, %s300_s26 }
  0x2d   : > { %s3583_s12 = scalar_lea.vmem (!%p295_p3), [#allocation3], %s3125_s27 }
  0x31   : > { %3416 = dma.done.wait (%p3533_p7), %s301_s11, 6144  }
  0x32   : > { %3418 = vsyncadd (%p3533_p7), %s301_s11, 4294961152  ;;  %p342_p9 = scmp.lt.s32.totalorder %s3516_s9, 1  ;;  %p2756_p8 = scmp.ne.s32.totalorder %s3516_s9, 0 }
  0x33   : > { %v357_v0 = vld [vmem:[%s4029_s0] sm:$0xff] (!%p2756_p8)  ;;  %v358_v1 = vld [vmem:[%s4029_s0 + $0x8] sm:$0xff] (!%p2756_p8) }
  0x34   : > { %s343_s18 = scalar_select %p342_p9, %s3516_s9, 1 }
  0x35   : > { %356 = sbr.rel (%p2756_p8) target bundleno = 369 (0x171), region = 60  ;;  %361 = vadd.xlane.f32.xlu0 (!%p2756_p8), %v357_v0  ;;  %v2757_v17 = vld [vmem:[%s4031_s2] ss:$0 sm:$0xff] (!%p2756_p8)  ;;  %v2758_v19 = vld [vmem:[%s4031_s2 + $0x1] ss:$0 sm:$0xff] (!%p2756_p8) }
  0x36   : > { %s2853_s21 = sshll.u32 %s343_s18, 7  ;;  %s2854_s30 = sshll.u32 %s343_s18, 4 }
  0x37   : > { %s3594_s16 = scalar_lea.vmem %s4035_s6, %s2853_s21  ;;  %s3599_s19 = scalar_lea.vmem %s4036_s7, %s2854_s30 }
  0x39   : > { %363 = vadd.xlane.f32.xlu0 (!%p2756_p8), %v358_v1 }
  0xc2   : > { %v362_v2 = vpop.xlane.xlu0 %361 }
  0xc3   : > { %v366_v3 = vmul.f32 0.0078125, %v362_v2 }
  0xc5   : > { %v368_v4 = vsub.f32 %v357_v0, %v366_v3 }
  0xc6   : > { %v364_v5 = vpop.xlane.xlu0 %363 }
  0xc7   : > { %v367_v6 = vmul.f32 0.0078125, %v364_v5  ;;  %v370_v7 = vmul.f32 %v368_v4, %v368_v4 }
  0xc9   : > { %v369_v8 = vsub.f32 %v358_v1, %v367_v6  ;;  %372 = vadd.xlane.f32.xlu1 %v370_v7 }
  0xcb   : > { %v371_v9 = vmul.f32 %v369_v8, %v369_v8 }
  0xcd   : > { %374 = vadd.xlane.f32.xlu1 %v371_v9 }
 0x156   : > { %v373_v10 = vpop.xlane.xlu1 %372 }
 0x157   : > { %v376_v11 = vmul.f32 0.0078125, %v373_v10 }
 0x159   : > { %v378_v12 = vadd.f32 1e-12, %v376_v11 }
 0x15a   : > { %v375_v13 = vpop.xlane.xlu1 %374 }
 0x15b   : > { %3183 = vrsqrt.f32 %v378_v12  ;;  %v377_v14 = vmul.f32 0.0078125, %v375_v13 }
 0x15d   : > { %v379_v15 = vadd.f32 1e-12, %v377_v14 }
 0x15f   : > { %3185 = vrsqrt.f32 %v379_v15 }
 0x165   : > { %v3184_v16 = vpop.eup %3183 }
 0x166   : > { %v382_v18 = vmul.f32 %v3184_v16, %v368_v4 }
 0x168   : > { %v388_v20 = vmul.f32 %v2757_v17, %v382_v18 }
 0x169   : > { %v3186_v21 = vpop.eup %3185 }
 0x16a   : > { %v394_v22 = vadd.f32 %v2758_v19, %v388_v20  ;;  %v383_v23 = vmul.f32 %v3186_v21, %v369_v8 }
 0x16c   : > { %396 = vst [vmem:[#allocation2] sm:$0xff] %v394_v22  ;;  %v389_v24 = vmul.f32 %v2757_v17, %v383_v23 }
 0x16e   : > { %v395_v25 = vadd.f32 %v2758_v19, %v389_v24 }
 0x170   : > { %397 = vst [vmem:[#allocation2 + $0x8] sm:$0xff] %v395_v25 }
 0x171 PF: > { %v3202_v26 = vld [vmem:[%s3583_s12 + $0x4] ss:$24 sps:$4 sm:$0xff]   ;;  %v3204_v27 = vld [vmem:[%s3583_s12] ss:$24 sps:$4 sm:$0xff]   ;;  %v3442_v28 = vmov 0   ;;  %v3443_v29 = vmov 0.0   ;;  %v663_v55 = vlaneseq }
 0x172   : > { %611 = vmatprep.mubr.bf16.mxu0 %v3442_v28  ;;  %2944 = vmatprep.subr.bf16.mxu1 %v3443_v29  ;;  %v3205_v30 = vld [vmem:[%s3583_s12 + $0x34] ss:$24 sps:$4 sm:$0xff]   ;;  %vm3444_vm0 = vmmov 0   ;;  %v3207_v31 = vld [vmem:[%s3583_s12 + $0x30] ss:$24 sps:$4 sm:$0xff]   ;;  %vm682_vm1 = vcmask 261120  }
 0x173   : > { %579 = vmatprep.subr.bf16.mxu0 %v3202_v26  ;;  %2960 = vmatprep.mubr.msk.bf16.mxu1 %vm3444_vm0, %v3443_v29  ;;  %v3208_v32 = vld [vmem:[%s3583_s12 + $0x64] ss:$24 sps:$4 sm:$0xff]   ;;  %v3210_v33 = vld [vmem:[%s3583_s12 + $0x60] ss:$24 sps:$4 sm:$0xff]   ;;  %v3211_v34 = vld [vmem:[%s3583_s12 + $0x94] ss:$24 sps:$4 sm:$0xff]  }
 0x174   : > { %580 = vmatpush1.bf16.msra.mxu0 %v3204_v27  ;;  %v3213_v35 = vld [vmem:[%s3583_s12 + $0x90] ss:$24 sps:$4 sm:$0xff]   ;;  %v3214_v36 = vld [vmem:[%s3583_s12 + $0xc4] ss:$24 sps:$4 sm:$0xff]   ;;  %v3216_v39 = vld [vmem:[%s3583_s12 + $0xc0] ss:$24 sps:$4 sm:$0xff]  }
 0x175   : > { %581 = vmatprep.subr.bf16.mxu0 %v3205_v30  ;;  %v3226_v37 = vld [vmem:[%s3583_s12 + $0x8] ss:$24 sps:$4 sm:$0xff]   ;;  %v3229_v38 = vld [vmem:[%s3583_s12 + $0x38] ss:$24 sps:$4 sm:$0xff]   ;;  %v3217_v40 = vld [vmem:[%s3583_s12 + $0xf4] ss:$24 sps:$4 sm:$0xff]  }
 0x176   : > { %2945 = vmatpush3.bf16.msra.mxu1 %v3226_v37  ;;  %v3232_v41 = vld [vmem:[%s3583_s12 + $0x68] ss:$24 sps:$4 sm:$0xff]   ;;  %v3220_v43 = vld [vmem:[%s3583_s12 + $0x124] ss:$24 sps:$4 sm:$0xff]   ;;  %v3223_v45 = vld [vmem:[%s3583_s12 + $0x154] ss:$24 sps:$4 sm:$0xff]  }
 0x177   : > { %2946 = vmatprep.subr.bf16.mxu1 %v3443_v29  ;;  %v3219_v42 = vld [vmem:[%s3583_s12 + $0xf0] ss:$24 sps:$4 sm:$0xff]   ;;  %v3222_v44 = vld [vmem:[%s3583_s12 + $0x120] ss:$24 sps:$4 sm:$0xff]   ;;  %v3661_v56 = vshrl.u32 %v663_v55, 7  ;;  %s3445_s21 = smov 96  }
 0x178   : > { %582 = vmatpush1.bf16.msra.mxu0 %v3207_v31  ;;  %v3235_v46 = vld [vmem:[%s3583_s12 + $0x98] ss:$24 sps:$4 sm:$0xff]   ;;  %v3238_v47 = vld [vmem:[%s3583_s12 + $0xc8] ss:$24 sps:$4 sm:$0xff]   ;;  %vm765_vm2 = vcmask 64512   ;;  %s3446_s24 = smov 64  }
 0x179   : > { %583 = vmatprep.subr.bf16.mxu0 %v3208_v32  ;;  %v3225_v48 = vld [vmem:[%s3583_s12 + $0x150] ss:$24 sps:$4 sm:$0xff]   ;;  %v3644_v50 = vld [vmem:[#allocation2 + $0x8] sm:$0xff]  ;;  %v3664_v57 = vsub.s32 1, %v3661_v56  ;;  %v677_v58 = vsub.s32 2, %v3661_v56  ;;  %v3677_v62 = vsub.s32 0, %v3661_v56 }
 0x17a   : > { %2947 = vmatpush3.bf16.msra.mxu1 %v3229_v38  ;;  %v3642_v49 = vld [vmem:[#allocation2] sm:$0xff]  ;;  %v3244_v53 = vld [vmem:[%s3583_s12 + $0x128] ss:$24 sps:$4 sm:$0xff]   ;;  %v3671_v60 = vld [vmem:[%s3599_s19 + $0x8] sm:$0x7]  ;;  %s3447_s15 = smov 32  }
 0x17b   : > { %2948 = vmatprep.subr.bf16.mxu1 %v3443_v29  ;;  %v3241_v51 = vld [vmem:[%s3583_s12 + $0xf8] ss:$24 sps:$4 sm:$0xff]   ;;  %v450_v52 = vpack.c.bf16 %v3644_v50, %v3642_v49  ;;  %v3674_v61 = vrot.slane %v3671_v60, %v677_v58  ;;  %vm1365_vm3 = vcmask 523264   ;;  %vm1367_vm4 = vcmask 785408   ;;  %p2847_p7 = scmp.ne.s32.totalorder %s3516_s9, 1 }
 0x17c   : > { %584 = vmatpush1.bf16.msra.mxu0 %v3210_v33  ;;  %v3247_v54 = vld [vmem:[%s3583_s12 + $0x158] ss:$24 sps:$4 sm:$0xff]   ;;  %vm3449_vm5 = vmmov (!%p2847_p7), 0   ;;  %vm2558_vm6 = vcmask (!%p2847_p7), 1040384   ;;  %vm2653_vm7 = vcmask (!%p2847_p7), 9216  }
 0x17d   : > { %585 = vmatprep.subr.bf16.mxu0 %v3211_v34  ;;  %v3668_v59 = vld [vmem:[%s3599_s19] sm:$0xff] }
 0x17e   : > { %2949 = vmatpush3.bf16.msra.mxu1 %v3232_v41  ;;  %v672_v63 = vrot.slane %v3668_v59, %v3664_v57  ;;  %v666_v1 = vrot.slane %v3668_v59, %v3677_v62  ;;  %v678_v9 = vrot.slane %v3668_v59, %v677_v58  ;;  %v3719_v16 = vld [vmem:[%s4030_s1] sm:$0x3] }
 0x17f   : > { %2950 = vmatprep.subr.bf16.mxu1 %v3443_v29  ;;  %v3723_v17 = vrot.slane %v3719_v16, %v3677_v62 }
 0x180   : > { %586 = vmatpush1.bf16.msra.mxu0 %v3213_v35 }
 0x181   : > { %587 = vmatprep.subr.bf16.mxu0 %v3214_v36 }
 0x182   : > { %2951 = vmatpush3.bf16.msra.mxu1 %v3235_v46 }
 0x183   : > { %2952 = vmatprep.subr.bf16.mxu1 %v3443_v29 }
 0x184   : > { %588 = vmatpush1.bf16.msra.mxu0 %v3216_v39 }
 0x185   : > { %589 = vmatprep.subr.bf16.mxu0 %v3217_v40 }
 0x186   : > { %2953 = vmatpush3.bf16.msra.mxu1 %v3238_v47 }
 0x187   : > { %2954 = vmatprep.subr.bf16.mxu1 %v3443_v29 }
 0x188   : > { %590 = vmatpush1.bf16.msra.mxu0 %v3219_v42 }
 0x189   : > { %591 = vmatprep.subr.bf16.mxu0 %v3220_v43 }
 0x18a   : > { %2955 = vmatpush3.bf16.msra.mxu1 %v3241_v51 }
 0x18b   : > { %2956 = vmatprep.subr.bf16.mxu1 %v3443_v29 }
 0x18c   : > { %592 = vmatpush1.bf16.msra.mxu0 %v3222_v44 }
 0x18d   : > { %593 = vmatprep.subr.bf16.mxu0 %v3223_v45 }
 0x18e   : > { %2957 = vmatpush3.bf16.msra.mxu1 %v3244_v53 }
 0x18f   : > { %2958 = vmatprep.subr.bf16.mxu1 %v3443_v29 }
 0x190   : > { %594 = vmatpush1.bf16.msra.mxu0 %v3225_v48 }
 0x191   : > { %3004 = vmatprep.subr.mxu0 %v3443_v29 }
 0x192   : > { %2959 = vmatpush3.bf16.msra.mxu1 %v3247_v54 }
 0x193   : > { %612 = vmatmul.mubr.bf16.vlgmr.msra.gmra.mrb[0].mxu0 %v450_v52  ;;  %2964 = vmatprep.subr.mxu1 %v3443_v29 }
 0x194   : > { %3006 = vmatprep.mubr.msk.f32.mxu0 %vm3444_vm0, %v3443_v29 }
 0x195   : > { %2961 = vmatmul.mubr.bf16.vlgmr.msra.gmra.mrb[0].mxu1 %v450_v52 }
 0x196   : > { %2966 = vmatprep.mubr.msk.f32.mxu1 %vm3444_vm0, %v3443_v29 }
 0x266   : > { %v613_v0 = vpop.f32.mrb[0].mxu0 }
 0x267   : > { %v615_v2 = vpop.f32.mrb[1].mxu0  ;;  %v3691_v7 = vadd.f32 %v666_v1, %v613_v0 }
 0x268   : > { %v3683_v3 = vadd.f32 %v672_v63, %v615_v2  ;;  %v617_v4 = vpop.f32.mrb[2].mxu0  ;;  %v656_v10 = vpop.f32.mrb[0].mxu1 }
 0x269   : > { %v619_v5 = vpop.f32.mrb[3].mxu0  ;;  %v3696_v8 = vadd.f32 %v666_v1, %v617_v4  ;;  %v3710_v11 = vadd.f32 %v678_v9, %v656_v10  ;;  %v2962_v12 = vpop.f32.mrb[1].mxu1  ;;  %v3776_v10 = vrot.slane %v3719_v16, %v3664_v57 }
 0x26a   : > { %v3685_v6 = vadd.f32 %v672_v63, %v619_v5  ;;  %852 = vrot.lane.b32.xlu1 %v3683_v3, %s3445_s21  ;;  %2965 = vmatpush3.xpose.msk.msra.mxu1 %vm682_vm1, %v3683_v3  ;;  %v659_v13 = vpop.f32.mrb[2].mxu1 }
 0x26b   : > { %2969 = vmatprep.subr.mxu1 %v3443_v29  ;;  %v3712_v14 = vadd.f32 %v678_v9, %v659_v13  ;;  %v2963_v15 = vpop.f32.mrb[3].mxu1 }
 0x26c   : > { %3005 = vmatpush3.xpose.msk.msra.mxu0 %vm682_vm1, %v3685_v6 }
 0x26d   : > { %2967 = vmatmul.mubr.msk.f32.vlgmr.msra.gmra.mrb[4].mxu1 %vm682_vm1, %v3691_v7  ;;  %3014 = vmatprep.subr.mxu0 %v3443_v29 }
 0x26e   : > { %850 = vrot.lane.b32.xlu1 %v3691_v7, %s3445_s21  ;;  %2971 = vmatprep.mubr.msk.f32.mxu1 %vm3444_vm0, %v3443_v29 }
 0x26f   : > { %3007 = vmatmul.mubr.msk.f32.vlgmr.msra.gmra.mrb[4].mxu0 %vm682_vm1, %v3696_v8  ;;  %2970 = vmatpush3.msra.mxu1 %v3710_v11 }
 0x270   : > { %3016 = vmatprep.mubr.msk.f32.mxu0 %vm3444_vm0, %v3443_v29  ;;  %2974 = vmatprep.subr.mxu1 %v3443_v29 }
 0x2dc   : > { %v853_v34 = vpop.permute.xlu1 %852 }
 0x2e0   : > { %v851_v36 = vpop.permute.xlu1 %850 }
 0x340   : > { %v755_v18 = vpop.f32.mrb[4].mxu1 }
 0x341   : > { %v759_v19 = vmul.f32 0.17677669, %v755_v18  ;;  %v2968_v20 = vpop.f32.mrb[5].mxu1 }
 0x342   : > { %v3725_v21 = vpop.f32.mrb[4].mxu0 }
 0x343   : > { %v3008_v22 = vpop.f32.mrb[5].mxu0  ;;  %v764_v23 = vadd.f32 %v3723_v17, %v759_v19  ;;  %v1445_v9 = vmul.f32 0.17677669, %v3725_v21 }
 0x345   : > { %v766_v24 = vsel %vm765_vm2, %v764_v23, -inf  ;;  %v3779_v12 = vadd.f32 %v3776_v10, %v1445_v9 }
 0x346   : > { %767 = vmax.xlane.f32.xlu0 %v766_v24 }
 0x347   : > { %v1451_v13 = vsel %vm765_vm2, %v3779_v12, -inf }
 0x3d3   : > { %v768_v25 = vpop.xlane.xlu0 %767 }
 0x3d4   : > { %v769_v26 = vsub.f32 %v764_v23, %v768_v25 }
 0x3d6   : > { %v770_v27 = vmul.f32 1.442695, %v769_v26 }
 0x3d8   : > { %3290 = vpow2.f32 %v770_v27 }
 0x3e2   : > { %v3291_v30 = vpop.eup %3290 }
 0x3e3   : > { %v772_v31 = vsel %vm765_vm2, %v3291_v30, 0.0 }
 0x3e4   : > { %773 = vadd.xlane.f32.xlu0 %v772_v31 }
 0x471   : > { %v774_v32 = vpop.xlane.xlu0 %773 }
 0x472   : > { %3292 = vrcp.f32 %v774_v32 }
 0x47c   : > { %v3293_v33 = vpop.eup %3292 }
 0x47d   : > { %v776_v35 = vmul.f32 %v3293_v33, %v3291_v30  ;;  %v3231_v33 = vld [vmem:[%s3583_s12 + $0x3c] ss:$24 sps:$4 sm:$0xff]  }
 0x47f   : > { %2972 = vmatmul.mubr.msk.f32.vlgmr.msra.gmra.mrb[6].mxu1 %vm765_vm2, %v776_v35  ;;  %v3237_v35 = vld [vmem:[%s3583_s12 + $0x9c] ss:$24 sps:$4 sm:$0xff]  }
 0x480   : > { %2975 = vmatpush3.xpose.msk.msra.mxu1 %vm682_vm1, %v853_v34  ;;  %2976 = vmatprep.mubr.msk.f32.mxu1 %vm3444_vm0, %v3443_v29  ;;  %v3234_v34 = vld [vmem:[%s3583_s12 + $0x6c] ss:$24 sps:$4 sm:$0xff]  }
 0x481   : > { %2979 = vmatprep.subr.mxu1 %v3443_v29 }
 0x483   : > { %2977 = vmatmul.mubr.msk.f32.vlgmr.msra.gmra.mrb[8].mxu1 %vm682_vm1, %v851_v36  ;;  %v3240_v36 = vld [vmem:[%s3583_s12 + $0xcc] ss:$24 sps:$4 sm:$0xff]  }
 0x484   : > { %2981 = vmatprep.mubr.msk.f32.mxu1 %vm3444_vm0, %v3443_v29 }
 0x552   : > { %v3738_v37 = vpop.f32.mrb[6].mxu1 }
 0x553   : > { %v2973_v38 = vpop.f32.mrb[7].mxu1 }
 0x554   : > { %v3243_v38 = vld [vmem:[%s3583_s12 + $0xfc] ss:$24 sps:$4 sm:$0xff]  }
 0x556   : > { %v924_v39 = vpop.f32.mrb[8].mxu1 }
 0x557   : > { %v928_v40 = vmul.f32 0.17677669, %v924_v39  ;;  %v2978_v41 = vpop.f32.mrb[9].mxu1  ;;  %v3246_v39 = vld [vmem:[%s3583_s12 + $0x12c] ss:$24 sps:$4 sm:$0xff]  }
 0x559   : > { %v929_v42 = vadd.f32 %v928_v40, %v3723_v17  ;;  %v3249_v40 = vld [vmem:[%s3583_s12 + $0x15c] ss:$24 sps:$4 sm:$0xff]  }
 0x55b   : > { %v930_v43 = vsel %vm765_vm2, %v929_v42, -inf }
 0x55c   : > { %931 = vmax.xlane.f32.xlu0 %v930_v43 }
 0x572   : > { %942 = vrot.lane.b32.xlu0 %v3710_v11, %s3445_s21 }
 0x576   : > { %1020 = vrot.lane.b32.xlu0 %v3683_v3, %s3446_s24 }
 0x57a   : > { %1018 = vrot.lane.b32.xlu0 %v3691_v7, %s3446_s24 }
 0x5e9   : > { %v932_v44 = vpop.xlane.xlu0 %931 }
 0x5ea   : > { %v933_v45 = vsub.f32 %v929_v42, %v932_v44 }
 0x5ec   : > { %v934_v46 = vmul.f32 1.442695, %v933_v45 }
 0x5ed   : > { %v943_v47 = vpop.permute.xlu0 %942 }
 0x5ee   : > { %3294 = vpow2.f32 %v934_v46  ;;  %2980 = vmatpush3.msra.mxu1 %v943_v47 }
 0x5ef   : > { %2984 = vmatprep.subr.mxu1 %v3443_v29 }
 0x5f1   : > { %v1021_v54 = vpop.permute.xlu0 %1020 }
 0x5f5   : > { %v1019_v58 = vpop.permute.xlu0 %1018 }
 0x5f8   : > { %v3295_v48 = vpop.eup %3294 }
 0x5f9   : > { %v936_v51 = vsel %vm765_vm2, %v3295_v48, 0.0 }
 0x5fa   : > { %937 = vadd.xlane.f32.xlu1 %v936_v51 }
 0x60b   : > { %1109 = vrot.lane.b32.xlu1 %v3710_v11, %s3446_s24 }
 0x60f   : > { %1187 = vrot.lane.b32.xlu1 %v3683_v3, %s3447_s15 }
 0x613   : > { %1185 = vrot.lane.b32.xlu1 %v3691_v7, %s3447_s15 }
 0x617   : > { %1535 = vrot.lane.b32.xlu1 %v3696_v8, %s3445_s21 }
 0x687   : > { %v938_v52 = vpop.xlane.xlu1 %937 }
 0x688   : > { %3296 = vrcp.f32 %v938_v52 }
 0x68b   : > { %v1110_v63 = vpop.permute.xlu1 %1109 }
 0x68f   : > { %v1188_v15 = vpop.permute.xlu1 %1187 }
 0x692   : > { %v3297_v53 = vpop.eup %3296 }
 0x693   : > { %v940_v55 = vmul.f32 %v3297_v53, %v3295_v48  ;;  %v1186_v19 = vpop.permute.xlu1 %1185 }
 0x695   : > { %2982 = vmatmul.mubr.msk.f32.vlgmr.msra.gmra.mrb[10].mxu1 %vm765_vm2, %v940_v55 }
 0x696   : > { %2985 = vmatpush3.xpose.msk.msra.mxu1 %vm682_vm1, %v1021_v54  ;;  %2986 = vmatprep.mubr.msk.f32.mxu1 %vm3444_vm0, %v3443_v29 }
 0x697   : > { %2989 = vmatprep.subr.mxu1 %v3443_v29  ;;  %v1536_v16 = vpop.permute.xlu1 %1535 }
 0x699   : > { %2987 = vmatmul.mubr.msk.f32.vlgmr.msra.gmra.mrb[12].mxu1 %vm682_vm1, %v1019_v58 }
 0x69a   : > { %2990 = vmatpush3.msra.mxu1 %v1110_v63  ;;  %2991 = vmatprep.mubr.msk.f32.mxu1 %vm3444_vm0, %v3443_v29 }
 0x69b   : > { %2994 = vmatprep.subr.mxu1 %v3443_v29 }
 0x768   : > { %v3767_v0 = vpop.f32.mrb[10].mxu1 }
 0x769   : > { %v2983_v1 = vpop.f32.mrb[11].mxu1 }
 0x76c   : > { %v1092_v2 = vpop.f32.mrb[12].mxu1 }
 0x76d   : > { %v1096_v3 = vmul.f32 0.17677669, %v1092_v2  ;;  %v2988_v4 = vpop.f32.mrb[13].mxu1 }
 0x76f   : > { %v1097_v5 = vadd.f32 %v1096_v3, %v3723_v17 }
 0x771   : > { %v1098_v7 = vsel %vm765_vm2, %v1097_v5, -inf }
 0x772   : > { %1099 = vmax.xlane.f32.xlu0 %v1098_v7 }
 0x788   : > { %1537 = vrot.lane.b32.xlu0 %v3685_v6, %s3445_s21 }
 0x7a7   : > { %1452 = vmax.xlane.f32.xlu0 %v1451_v13 }
 0x7ff   : > { %v1100_v18 = vpop.xlane.xlu0 %1099 }
 0x800   : > { %v1101_v20 = vsub.f32 %v1097_v5, %v1100_v18 }
 0x802   : > { %v1102_v22 = vmul.f32 1.442695, %v1101_v20 }
 0x803   : > { %v1538_v23 = vpop.permute.xlu0 %1537 }
 0x804   : > { %3298 = vpow2.f32 %v1102_v22  ;;  %3015 = vmatpush3.xpose.msk.msra.mxu0 %vm682_vm1, %v1538_v23 }
 0x805   : > { %3024 = vmatprep.subr.mxu0 %v3443_v29 }
 0x807   : > { %3017 = vmatmul.mubr.msk.f32.vlgmr.msra.gmra.mrb[6].mxu0 %vm682_vm1, %v1536_v16 }
 0x808   : > { %3026 = vmatprep.mubr.msk.f32.mxu0 %vm3444_vm0, %v3443_v29 }
 0x80e   : > { %v3299_v21 = vpop.eup %3298 }
 0x80f   : > { %v1104_v24 = vsel %vm765_vm2, %v3299_v21, 0.0 }
 0x810   : > { %1105 = vadd.xlane.f32.xlu1 %v1104_v24 }
 0x821   : > { %1705 = vrot.lane.b32.xlu1 %v3685_v6, %s3446_s24 }
 0x825   : > { %1703 = vrot.lane.b32.xlu1 %v3696_v8, %s3446_s24 }
 0x829   : > { %1872 = vrot.lane.b32.xlu1 %v3685_v6, %s3447_s15 }
 0x82d   : > { %1870 = vrot.lane.b32.xlu1 %v3696_v8, %s3447_s15  ;;  %v3228_v8 = vld [vmem:[%s3583_s12 + $0xc] ss:$24 sps:$4 sm:$0xff]  }
 0x834   : > { %v1453_v46 = vpop.xlane.xlu0 %1452 }
 0x835   : > { %v1454_v47 = vsub.f32 %v3779_v12, %v1453_v46 }
 0x837   : > { %v1455_v51 = vmul.f32 1.442695, %v1454_v47 }
 0x89d   : > { %v1106_v25 = vpop.xlane.xlu1 %1105 }
 0x89e   : > { %3300 = vrcp.f32 %v1106_v25 }
 0x89f   : > { %3302 = vpow2.f32 %v1455_v51 }
 0x8a1   : > { %v1706_v26 = vpop.permute.xlu1 %1705 }
 0x8a2   : > { %3025 = vmatpush3.xpose.msk.msra.mxu0 %vm682_vm1, %v1706_v26 }
 0x8a3   : > { %3034 = vmatprep.subr.mxu0 %v3443_v29 }
 0x8a5   : > { %v1704_v27 = vpop.permute.xlu1 %1703 }
 0x8a6   : > { %3027 = vmatmul.mubr.msk.f32.vlgmr.msra.gmra.mrb[8].mxu0 %vm682_vm1, %v1704_v27 }
 0x8a7   : > { %3036 = vmatprep.mubr.msk.f32.mxu0 %vm3444_vm0, %v3443_v29 }
 0x8a8   : > { %v3301_v30 = vpop.eup %3300 }
 0x8a9   : > { %v1108_v31 = vmul.f32 %v3301_v30, %v3299_v21  ;;  %v1873_v6 = vpop.permute.xlu1 %1872  ;;  %v3303_v18 = vpop.eup %3302 }
 0x8aa   : > { %3035 = vmatpush3.xpose.msk.msra.mxu0 %vm682_vm1, %v1873_v6  ;;  %v1457_v22 = vsel %vm765_vm2, %v3303_v18, 0.0 }
 0x8ab   : > { %2992 = vmatmul.mubr.msk.f32.vlgmr.msra.gmra.mrb[14].mxu1 %vm765_vm2, %v1108_v31  ;;  %3044 = vmatprep.subr.bf16.mxu0 %v3443_v29 }
 0x8ac   : > { %2995 = vmatpush3.xpose.msk.msra.mxu1 %vm682_vm1, %v1188_v15  ;;  %2996 = vmatprep.mubr.msk.f32.mxu1 %vm3444_vm0, %v3443_v29 }
 0x8ad   : > { %v1871_v32 = vpop.permute.xlu1 %1870  ;;  %2999 = vmatprep.subr.mxu1 %v3443_v29 }
 0x8ae   : > { %3037 = vmatmul.mubr.msk.f32.vlgmr.msra.gmra.mrb[10].mxu0 %vm682_vm1, %v1871_v32 }
 0x8af   : > { %2997 = vmatmul.mubr.msk.f32.vlgmr.msra.gmra.mrb[16].mxu1 %vm682_vm1, %v1186_v19  ;;  %3045 = vmatpush3.bf16.msra.mxu0 %v3228_v8 }
 0x8b0   : > { %3001 = vmatprep.mubr.msk.f32.mxu1 %vm3444_vm0, %v3443_v29  ;;  %3046 = vmatprep.subr.bf16.mxu0 %v3443_v29 }
 0x8b1   : > { %3060 = vmatprep.mubr.msk.bf16.mxu0 %vm3444_vm0, %v3443_v29 }
 0x8b3   : > { %3047 = vmatpush3.bf16.msra.mxu0 %v3231_v33 }
 0x8b4   : > { %3048 = vmatprep.subr.bf16.mxu0 %v3443_v29 }
 0x8b7   : > { %3049 = vmatpush3.bf16.msra.mxu0 %v3234_v34 }
 0x8b8   : > { %3050 = vmatprep.subr.bf16.mxu0 %v3443_v29 }
 0x8bb   : > { %3051 = vmatpush3.bf16.msra.mxu0 %v3237_v35 }
 0x8bc   : > { %3052 = vmatprep.subr.bf16.mxu0 %v3443_v29 }
 0x8bf   : > { %3053 = vmatpush3.bf16.msra.mxu0 %v3240_v36 }
 0x8c0   : > { %3054 = vmatprep.subr.bf16.mxu0 %v3443_v29 }
 0x8c3   : > { %3055 = vmatpush3.bf16.msra.mxu0 %v3243_v38 }
 0x8c4   : > { %3056 = vmatprep.subr.bf16.mxu0 %v3443_v29 }
 0x8c7   : > { %3057 = vmatpush3.bf16.msra.mxu0 %v3246_v39 }
 0x8c8   : > { %3058 = vmatprep.subr.bf16.mxu0 %v3443_v29 }
 0x8cb   : > { %3059 = vmatpush3.bf16.msra.mxu0 %v3249_v40 }
 0x8da   : > { %v1609_v41 = vpop.f32.mrb[6].mxu0 }
 0x8db   : > { %v1613_v42 = vmul.f32 0.17677669, %v1609_v41  ;;  %v3018_v43 = vpop.f32.mrb[7].mxu0 }
 0x8dd   : > { %v1614_v44 = vadd.f32 %v1613_v42, %v3776_v10 }
 0x8df   : > { %v1615_v45 = vsel %vm765_vm2, %v1614_v44, -inf }
 0x8e0   : > { %1616 = vmax.xlane.f32.xlu0 %v1615_v45 }
 0x96d   : > { %v1617_v48 = vpop.xlane.xlu0 %1616 }
 0x96e   : > { %v1618_v53 = vsub.f32 %v1614_v44, %v1617_v48 }
 0x970   : > { %v1619_v55 = vmul.f32 1.442695, %v1618_v53 }
 0x972   : > { %3304 = vpow2.f32 %v1619_v55 }
 0x979   : > { %v1777_v52 = vpop.f32.mrb[8].mxu0 }
 0x97a   : > { %v3028_v54 = vpop.f32.mrb[9].mxu0  ;;  %v1781_v5 = vmul.f32 0.17677669, %v1777_v52 }
 0x97c   : > { %v1782_v20 = vadd.f32 %v1781_v5, %v3776_v10  ;;  %v3305_v16 = vpop.eup %3304 }
 0x97d   : > { %v1621_v21 = vsel %vm765_vm2, %v3305_v16, 0.0 }
 0x97e   : > { %v3833_v58 = vpop.f32.mrb[14].mxu1  ;;  %v1783_v23 = vsel %vm765_vm2, %v1782_v20, -inf }
 0x97f   : > { %v2993_v63 = vpop.f32.mrb[15].mxu1 }
 0x981   : > { %v1944_v1 = vpop.f32.mrb[10].mxu0 }
 0x982   : > { %v1948_v2 = vmul.f32 0.17677669, %v1944_v1  ;;  %v1259_v3 = vpop.f32.mrb[16].mxu1  ;;  %v3038_v4 = vpop.f32.mrb[11].mxu0 }
 0x983   : > { %v1263_v7 = vmul.f32 0.17677669, %v1259_v3  ;;  %v2998_v9 = vpop.f32.mrb[17].mxu1 }
 0x984   : > { %v1949_v12 = vadd.f32 %v1948_v2, %v3776_v10 }
 0x985   : > { %v1264_v13 = vadd.f32 %v1263_v7, %v3723_v17 }
 0x986   : > { %v1950_v15 = vsel %vm765_vm2, %v1949_v12, -inf }
 0x987   : > { %1951 = vmax.xlane.f32.xlu0 %v1950_v15  ;;  %v1265_v19 = vsel %vm765_vm2, %v1264_v13, -inf }
 0x988   : > { %1266 = vmax.xlane.f32.xlu1 %v1265_v19 }
 0x98b   : > { %1458 = vadd.xlane.f32.xlu0 %v1457_v22 }
 0x98c   : > { %1784 = vmax.xlane.f32.xlu1 %v1783_v23 }
 0x990   : > { %1622 = vadd.xlane.f32.xlu1 %v1621_v21 }
 0xa14   : > { %v1952_v17 = vpop.xlane.xlu0 %1951 }
 0xa15   : > { %v1953_v24 = vsub.f32 %v1949_v12, %v1952_v17  ;;  %v1267_v25 = vpop.xlane.xlu1 %1266 }
 0xa16   : > { %v1268_v26 = vsub.f32 %v1264_v13, %v1267_v25 }
 0xa17   : > { %v1954_v27 = vmul.f32 1.442695, %v1953_v24 }
 0xa18   : > { %v1269_v30 = vmul.f32 1.442695, %v1268_v26  ;;  %v1459_v40 = vpop.xlane.xlu0 %1458 }
 0xa19   : > { %3306 = vpow2.f32 %v1954_v27  ;;  %v1785_v31 = vpop.xlane.xlu1 %1784 }
 0xa1a   : > { %v1786_v10 = vsub.f32 %v1782_v20, %v1785_v31  ;;  %3308 = vpow2.f32 %v1269_v30 }
 0xa1c   : > { %v1787_v6 = vmul.f32 1.442695, %v1786_v10 }
 0xa1d   : > { %v1623_v38 = vpop.xlane.xlu1 %1622 }
 0xa1e   : > { %3310 = vpow2.f32 %v1787_v6  ;;  %v2055_v6 = vsub.s32 3, %v3661_v56 }
 0xa23   : > { %v3307_v8 = vpop.eup %3306 }
 0xa24   : > { %v1956_v32 = vsel %vm765_vm2, %v3307_v8, 0.0  ;;  %v3309_v33 = vpop.eup %3308 }
 0xa25   : > { %1957 = vadd.xlane.f32.xlu1 %v1956_v32  ;;  %v1271_v35 = vsel %vm765_vm2, %v3309_v33, 0.0 }
 0xa28   : > { %v3311_v34 = vpop.eup %3310 }
 0xa29   : > { %1272 = vadd.xlane.f32.xlu1 %v1271_v35  ;;  %v1789_v36 = vsel %vm765_vm2, %v3311_v34, 0.0 }
 0xa2a   : > { %1790 = vadd.xlane.f32.xlu0 %v1789_v36 }
 0xa3a   : > { %1627 = vrot.lane.b32.xlu1 %v3712_v14, %s3445_s21 }
 0xa3e   : > { %1794 = vrot.lane.b32.xlu1 %v3712_v14, %s3446_s24 }
 0xa40   : > { %1276 = vrot.lane.b32.xlu0 %v3710_v11, %s3447_s15 }
 0xa44   : > { %1961 = vrot.lane.b32.xlu0 %v3712_v14, %s3447_s15 }
 0xab2   : > { %v1958_v39 = vpop.xlane.xlu1 %1957 }
 0xab6   : > { %v1273_v41 = vpop.xlane.xlu1 %1272 }
 0xab7   : > { %3312 = vrcp.f32 %v1273_v41  ;;  %v1791_v42 = vpop.xlane.xlu0 %1790  ;;  %v3252_v41 = vld [vmem:[%s3583_s12 + $0x14] ss:$24 sps:$4 sm:$0xff]  }
 0xab8   : > { %3314 = vrcp.f32 %v1459_v40  ;;  %v3250_v40 = vld [vmem:[%s3583_s12 + $0x10] ss:$24 sps:$4 sm:$0xff]  }
 0xab9   : > { %3316 = vrcp.f32 %v1623_v38 }
 0xaba   : > { %3318 = vrcp.f32 %v1791_v42  ;;  %v1628_v47 = vpop.permute.xlu1 %1627  ;;  %v3255_v42 = vld [vmem:[%s3583_s12 + $0x44] ss:$24 sps:$4 sm:$0xff]  }
 0xabb   : > { %v1277_v43 = vpop.permute.xlu0 %1276  ;;  %3320 = vrcp.f32 %v1958_v39 }
 0xabc   : > { %3000 = vmatpush3.msra.mxu1 %v1277_v43  ;;  %v3253_v43 = vld [vmem:[%s3583_s12 + $0x40] ss:$24 sps:$4 sm:$0xff]  }
 0xabd   : > { %3009 = vmatprep.subr.mxu1 %v3443_v29 }
 0xabe   : > { %v1795_v53 = vpop.permute.xlu1 %1794 }
 0xabf   : > { %v1962_v55 = vpop.permute.xlu0 %1961 }
 0xac1   : > { %v3313_v44 = vpop.eup %3312 }
 0xac2   : > { %v1275_v45 = vmul.f32 %v3313_v44, %v3309_v33  ;;  %v3315_v46 = vpop.eup %3314 }
 0xac3   : > { %v1461_v11 = vmul.f32 %v3315_v46, %v3303_v18  ;;  %v3317_v48 = vpop.eup %3316 }
 0xac4   : > { %3002 = vmatmul.mubr.msk.f32.vlgmr.msra.gmra.mrb[18].mxu1 %vm765_vm2, %v1275_v45  ;;  %v1625_v51 = vmul.f32 %v3317_v48, %v3305_v16  ;;  %v3319_v52 = vpop.eup %3318 }
 0xac5   : > { %3010 = vmatpush3.msra.mxu1 %v3712_v14  ;;  %3011 = vmatprep.mubr.msk.f32.mxu1 %vm3444_vm0, %v3443_v29  ;;  %v1793_v14 = vmul.f32 %v3319_v52, %v3311_v34  ;;  %v3321_v54 = vpop.eup %3320  ;;  %v3256_v52 = vld [vmem:[%s3583_s12 + $0x70] ss:$24 sps:$4 sm:$0xff]  }
 0xac6   : > { %3019 = vmatprep.subr.mxu1 %v3443_v29  ;;  %v1960_v63 = vmul.f32 %v3321_v54, %v3307_v8  ;;  %v2056_v8 = vrot.slane %v3668_v59, %v2055_v6  ;;  %v3264_v54 = vld [vmem:[%s3583_s12 + $0xd4] ss:$24 sps:$4 sm:$0xff]  }
 0xac7   : > { %v3282_v6 = vld [vmem:[%s3594_s16 + $0x60] sm:$0xff]  }
 0xac8   : > { %3012 = vmatmul.mubr.msk.f32.vlgmr.msra.gmra.mrb[20].mxu1 %vm765_vm2, %v1461_v11 }
 0xac9   : > { %3020 = vmatpush3.msra.mxu1 %v1628_v47  ;;  %3021 = vmatprep.mubr.msk.f32.mxu1 %vm3444_vm0, %v3443_v29 }
 0xaca   : > { %3029 = vmatprep.subr.mxu1 %v3443_v29 }
 0xacc   : > { %3022 = vmatmul.mubr.msk.f32.vlgmr.msra.gmra.mrb[22].mxu1 %vm765_vm2, %v1625_v51  ;;  %v3258_v51 = vld [vmem:[%s3583_s12 + $0x74] ss:$24 sps:$4 sm:$0xff]  }
 0xacd   : > { %3030 = vmatpush3.msra.mxu1 %v1795_v53  ;;  %3031 = vmatprep.mubr.msk.f32.mxu1 %vm3444_vm0, %v3443_v29  ;;  %v3261_v53 = vld [vmem:[%s3583_s12 + $0xa4] ss:$24 sps:$4 sm:$0xff]  }
 0xace   : > { %3039 = vmatprep.subr.mxu1 %v3443_v29 }
 0xad0   : > { %3032 = vmatmul.mubr.msk.f32.vlgmr.msra.gmra.mrb[24].mxu1 %vm765_vm2, %v1793_v14  ;;  %v3259_v14 = vld [vmem:[%s3583_s12 + $0xa0] ss:$24 sps:$4 sm:$0xff]  }
 0xad1   : > { %3040 = vmatpush3.msra.mxu1 %v1962_v55  ;;  %3041 = vmatprep.mubr.msk.f32.mxu1 %vm3444_vm0, %v3443_v29  ;;  %v3262_v55 = vld [vmem:[%s3583_s12 + $0xd0] ss:$24 sps:$4 sm:$0xff]  }
 0xad2   : > { %2259 = vmatprep.subr.bf16.mxu1 %v3252_v41 }
 0xad4   : > { %3042 = vmatmul.mubr.msk.f32.vlgmr.msra.gmra.mrb[26].mxu1 %vm765_vm2, %v1960_v63  ;;  %v3267_v63 = vld [vmem:[%s3583_s12 + $0x104] ss:$24 sps:$4 sm:$0xff]  }
 0xad5   : > { %2291 = vmatprep.mubr.bf16.mxu1 %v3442_v28  ;;  %2260 = vmatpush1.bf16.msra.mxu1 %v3250_v40 }
 0xad6   : > { %2261 = vmatprep.subr.bf16.mxu1 %v3255_v42 }
 0xad9   : > { %2262 = vmatpush1.bf16.msra.mxu1 %v3253_v43 }
 0xada   : > { %2263 = vmatprep.subr.bf16.mxu1 %v3258_v51 }
 0xadd   : > { %2264 = vmatpush1.bf16.msra.mxu1 %v3256_v52 }
 0xade   : > { %2265 = vmatprep.subr.bf16.mxu1 %v3261_v53 }
 0xae1   : > { %2266 = vmatpush1.bf16.msra.mxu1 %v3259_v14 }
 0xae2   : > { %2267 = vmatprep.subr.bf16.mxu1 %v3264_v54 }
 0xae5   : > { %2268 = vmatpush1.bf16.msra.mxu1 %v3262_v55 }
 0xae6   : > { %2269 = vmatprep.subr.bf16.mxu1 %v3267_v63 }
 0xb97   : > { %v1348_v1 = vpop.f32.mrb[18].mxu1 }
 0xb98   : > { %v3003_v2 = vpop.f32.mrb[19].mxu1 }
 0xb99   : > { %v3268_v2 = vld [vmem:[%s3583_s12 + $0x130] ss:$24 sps:$4 sm:$0xff]  }
 0xb9b   : > { %v1531_v3 = vpop.f32.mrb[20].mxu1 }
 0xb9c   : > { %v3013_v4 = vpop.f32.mrb[21].mxu1 }
 0xb9d   : > { %v3273_v4 = vld [vmem:[%s3583_s12 + $0x164] ss:$24 sps:$4 sm:$0xff]  }
 0xb9f   : > { %v1699_v5 = vpop.f32.mrb[22].mxu1 }
 0xba0   : > { %v3187_v7 = vpack.i.bf16 %v1699_v5, %v3767_v0  ;;  %v3023_v9 = vpop.f32.mrb[23].mxu1  ;;  %v3271_v5 = vld [vmem:[%s3583_s12 + $0x160] ss:$24 sps:$4 sm:$0xff]  }
 0xba2   : > { %3188 = vrot.lane.b32.xlu1 %v3187_v7, %s3447_s15 }
 0xba3   : > { %v1866_v12 = vpop.f32.mrb[24].mxu1 }
 0xba4   : > { %v3192_v13 = vpack.i.bf16 %v1866_v12, %v3833_v58  ;;  %v3033_v15 = vpop.f32.mrb[25].mxu1 }
 0xba6   : > { %3193 = vrot.lane.b32.xlu0 %v3192_v13, %s3446_s24 }
 0xba7   : > { %v2033_v29 = vpop.f32.mrb[26].mxu1 }
 0xba8   : > { %v3197_v18 = vpack.i.bf16 %v2033_v29, %v1348_v1  ;;  %v3043_v19 = vpop.f32.mrb[27].mxu1  ;;  %v3265_v1 = vld [vmem:[%s3583_s12 + $0x100] ss:$24 sps:$4 sm:$0xff]  }
 0xba9   : > { %2270 = vmatpush1.bf16.msra.mxu1 %v3265_v1 }
 0xbaa   : > { %3198 = vrot.lane.b32.xlu1 %v3197_v18, %s3445_s21  ;;  %v2157_v18 = vsub.s32 7, %v3661_v56 }
 0xc14   : > { %v3189_v28 = vpop.permute.xlu1 %3188 }
 0xc15   : > { %v3191_v22 = vunpack.i.h.bf16 %v3189_v28  ;;  %v3190_v23 = vunpack.i.l.bf16 %v3189_v28 }
 0xc17   : > { %v2049_v17 = vsel %vm682_vm1, %v1531_v3, %v3191_v22  ;;  %v1364_v58 = vsel %vm682_vm1, %v3738_v37, %v3190_v23  ;;  %v3270_v3 = vld [vmem:[%s3583_s12 + $0x134] ss:$24 sps:$4 sm:$0xff]   ;;  %v2164_v23 = vrot.slane %v3671_v60, %v3677_v62  ;;  %v3276_v60 = vld [vmem:[%s3594_s16 + $0x48] sm:$0xff]  }
 0xc18   : > { %v3194_v20 = vpop.permute.xlu0 %3193  ;;  %2271 = vmatprep.subr.bf16.mxu1 %v3270_v3  ;;  %v3277_v62 = vld [vmem:[%s3594_s16 + $0x8] sm:$0xff]  }
 0xc19   : > { %v3196_v16 = vunpack.i.h.bf16 %v3194_v20  ;;  %v3195_v0 = vunpack.i.l.bf16 %v3194_v20  ;;  %2272 = vmatpush1.bf16.msra.mxu1 %v3268_v2  ;;  %v2158_v20 = vrot.slane %v3668_v59, %v2157_v18 }
 0xc1a   : > { %2273 = vmatprep.subr.bf16.mxu1 %v3273_v4 }
 0xc1b   : > { %v2050_v26 = vsel %vm1365_vm3, %v2049_v17, %v3196_v16  ;;  %v1366_v27 = vsel %vm1365_vm3, %v1364_v58, %v3195_v0 }
 0xc1c   : > { %v3199_v21 = vpop.permute.xlu1 %3198 }
 0xc1d   : > { %v3201_v24 = vunpack.i.h.bf16 %v3199_v21  ;;  %v3200_v25 = vunpack.i.l.bf16 %v3199_v21  ;;  %2274 = vmatpush1.bf16.msra.mxu1 %v3271_v5 }
 0xc1f   : > { %v1368_v30 = vsel %vm1367_vm4, %v1366_v27, %v3200_v25  ;;  %v2051_v31 = vsel %vm1367_vm4, %v2050_v26, %v3201_v24  ;;  %v3274_v25 = vld [vmem:[%s3594_s16 + $0x40] sm:$0xff]   ;;  %v3278_v27 = vld [vmem:[%s3594_s16 + $0x50] sm:$0xff]  }
 0xc20   : > { %v2052_v10 = vpack.c.bf16 %v2051_v31, %v1368_v30  ;;  %v3275_v26 = vld [vmem:[%s3594_s16] sm:$0xff]   ;;  %2905 = vmatprep.subr.bf16.mxu0 %v3274_v25  ;;  %v3279_v30 = vld [vmem:[%s3594_s16 + $0x10] sm:$0xff]   ;;  %v3280_v31 = vld [vmem:[%s3594_s16 + $0x58] sm:$0xff]  }
 0xc22   : > { %3061 = vmatmul.mubr.bf16.vlgmr.msra.gmra.mrb[12].mxu0 %v2052_v10  ;;  %v3281_v10 = vld [vmem:[%s3594_s16 + $0x18] sm:$0xff]  }
 0xc23   : > { %2906 = vmatpush3.bf16.msra.mxu0 %v3275_v26 }
 0xc24   : > { %2907 = vmatprep.subr.bf16.mxu0 %v3276_v60 }
 0xc27   : > { %2908 = vmatpush3.bf16.msra.mxu0 %v3277_v62 }
 0xc28   : > { %2909 = vmatprep.subr.bf16.mxu0 %v3278_v27 }
 0xc2b   : > { %2910 = vmatpush3.bf16.msra.mxu0 %v3279_v30 }
 0xc2c   : > { %2911 = vmatprep.subr.bf16.mxu0 %v3280_v31 }
 0xc2f   : > { %2912 = vmatpush3.bf16.msra.mxu0 %v3281_v10 }
 0xc30   : > { %2913 = vmatprep.subr.bf16.mxu0 %v3282_v6  ;;  %v2374_v6 = vsub.s32 6, %v3661_v56 }
 0xcf5   : > { %v2123_v32 = vpop.f32.mrb[12].mxu0 }
 0xcf6   : > { %v2124_v33 = vadd.f32 %v2123_v32, %v2056_v8  ;;  %v3062_v34 = vpop.f32.mrb[13].mxu0  ;;  %v3284_v32 = vld [vmem:[%s3594_s16 + $0x68] sm:$0xff]  }
 0xcf7   : > { %v2126_v37 = vpop.f32.mrb[14].mxu0  ;;  %v3286_v34 = vld [vmem:[%s3594_s16 + $0x70] sm:$0xff]  }
 0xcf8   : > { %v2127_v35 = vadd.f32 %v2126_v37, %v2056_v8  ;;  %v3063_v36 = vpop.f32.mrb[15].mxu0  ;;  %v2130_v38 = vadd.f32 %v2124_v33, %v3642_v49  ;;  %v3283_v8 = vld [vmem:[%s3594_s16 + $0x20] sm:$0xff]   ;;  %v3285_v33 = vld [vmem:[%s3594_s16 + $0x28] sm:$0xff]   ;;  %v3287_v37 = vld [vmem:[%s3594_s16 + $0x30] sm:$0xff]  }
 0xcf9   : > { %2914 = vmatpush3.bf16.msra.mxu0 %v3283_v8  ;;  %v3289_v36 = vld [vmem:[%s3594_s16 + $0x38] sm:$0xff]  }
 0xcfa   : > { %2132 = vadd.xlane.f32.xlu0 %v2130_v38  ;;  %v2131_v39 = vadd.f32 %v2127_v35, %v3644_v50  ;;  %2915 = vmatprep.subr.bf16.mxu0 %v3284_v32  ;;  %v3288_v35 = vld [vmem:[%s3594_s16 + $0x78] sm:$0xff]   ;;  %v2375_v32 = vrot.slane %v3668_v59, %v2374_v6  ;;  %v2848_v6 = vld [vmem:[%s4033_s4] ss:$0 sm:$0xff] (!%p2847_p7) }
 0xcfc   : > { %2134 = vadd.xlane.f32.xlu1 %v2131_v39 }
 0xcfd   : > { %2916 = vmatpush3.bf16.msra.mxu0 %v3285_v33 }
 0xcfe   : > { %2917 = vmatprep.subr.bf16.mxu0 %v3286_v34 }
 0xd01   : > { %2918 = vmatpush3.bf16.msra.mxu0 %v3287_v37 }
 0xd02   : > { %2919 = vmatprep.subr.bf16.mxu0 %v3288_v35 }
 0xd05   : > { %2920 = vmatpush3.bf16.msra.mxu0 %v3289_v36 }
 0xd87   : > { %v2133_v44 = vpop.xlane.xlu0 %2132 }
 0xd88   : > { %v2137_v45 = vmul.f32 0.0078125, %v2133_v44 }
 0xd89   : > { %v2135_v46 = vpop.xlane.xlu1 %2134 }
 0xd8a   : > { %v2139_v49 = vsub.f32 %v2130_v38, %v2137_v45  ;;  %v2138_v50 = vmul.f32 0.0078125, %v2135_v46  ;;  %v2173_v38 = vsub.s32 4, %v3661_v56 }
 0xd8c   : > { %v2140_v11 = vsub.f32 %v2131_v39, %v2138_v50  ;;  %v2141_v47 = vmul.f32 %v2139_v49, %v2139_v49  ;;  %v2168_v39 = vrot.slane %v3668_v59, 1  ;;  %v2174_v40 = vrot.slane %v3668_v59, %v2173_v38 }
 0xd8e   : > { %2143 = vadd.xlane.f32.xlu0 %v2141_v47  ;;  %v2142_v48 = vmul.f32 %v2140_v11, %v2140_v11  ;;  %v2178_v41 = vrot.slane %v2168_v39, %v2173_v38 }
 0xd92   : > { %2145 = vadd.xlane.f32.xlu0 %v2142_v48 }
 0xe1b   : > { %v2144_v7 = vpop.xlane.xlu0 %2143 }
 0xe1c   : > { %v2147_v9 = vmul.f32 0.0078125, %v2144_v7 }
 0xe1e   : > { %v2149_v12 = vadd.f32 1e-12, %v2147_v9 }
 0xe1f   : > { %v2146_v13 = vpop.xlane.xlu0 %2145 }
 0xe20   : > { %3322 = vrsqrt.f32 %v2149_v12  ;;  %v2148_v15 = vmul.f32 0.0078125, %v2146_v13 }
 0xe22   : > { %v2150_v29 = vadd.f32 1e-12, %v2148_v15 }
 0xe24   : > { %3324 = vrsqrt.f32 %v2150_v29 }
 0xe2a   : > { %v3323_v19 = vpop.eup %3322 }
 0xe2b   : > { %v2153_v28 = vmul.f32 %v3323_v19, %v2139_v49 }
 0xe2d   : > { %v2159_v0 = vmul.f32 %v2158_v20, %v2153_v28 }
 0xe2e   : > { %v3325_v22 = vpop.eup %3324 }
 0xe2f   : > { %v2154_v16 = vmul.f32 %v3325_v22, %v2140_v11  ;;  %v3905_v17 = vadd.f32 %v2164_v23, %v2159_v0 }
 0xe31   : > { %v2160_v21 = vmul.f32 %v2158_v20, %v2154_v16 }
 0xe33   : > { %v3907_v58 = vadd.f32 %v2164_v23, %v2160_v21 }
 0xe35   : > { %v2170_v24 = vpack.c.bf16 %v3907_v58, %v3905_v17 }
 0xe37   : > { %2292 = vmatmul.mubr.bf16.vlgmr.msra.gmra.mrb[28].mxu1 %v2170_v24 }
 0xf0a   : > { %v2293_v42 = vpop.f32.mrb[28].mxu1 }
 0xf0b   : > { %v2294_v43 = vadd.f32 %v2293_v42, %v2174_v40  ;;  %v2295_v44 = vpop.f32.mrb[29].mxu1 }
 0xf0c   : > { %v2296_v45 = vadd.f32 %v2295_v44, %v2178_v41  ;;  %v2297_v46 = vpop.f32.mrb[30].mxu1 }
 0xf0d   : > { %v2302_v49 = vmul.f32 %v2294_v43, %v2294_v43  ;;  %v2298_v50 = vadd.f32 %v2297_v46, %v2174_v40  ;;  %v2299_v11 = vpop.f32.mrb[31].mxu1 }
 0xf0e   : > { %v2303_v47 = vmul.f32 %v2296_v45, %v2296_v45  ;;  %v2300_v48 = vadd.f32 %v2299_v11, %v2178_v41 }
 0xf0f   : > { %v2306_v51 = vmul.f32 %v2302_v49, %v2294_v43  ;;  %v2304_v52 = vmul.f32 %v2298_v50, %v2298_v50 }
 0xf10   : > { %v2307_v53 = vmul.f32 %v2303_v47, %v2296_v45  ;;  %v2305_v14 = vmul.f32 %v2300_v48, %v2300_v48 }
 0xf11   : > { %v2310_v54 = vmul.f32 0.044715, %v2306_v51  ;;  %v2308_v55 = vmul.f32 %v2304_v52, %v2298_v50 }
 0xf12   : > { %v2311_v63 = vmul.f32 0.044715, %v2307_v53  ;;  %v2309_v1 = vmul.f32 %v2305_v14, %v2300_v48 }
 0xf13   : > { %v2314_v2 = vadd.f32 %v2310_v54, %v2294_v43  ;;  %v2312_v3 = vmul.f32 0.044715, %v2308_v55 }
 0xf14   : > { %v2315_v4 = vadd.f32 %v2311_v63, %v2296_v45  ;;  %v2313_v5 = vmul.f32 0.044715, %v2309_v1 }
 0xf15   : > { %v2318_v7 = vmul.f32 0.7978846, %v2314_v2  ;;  %v2316_v9 = vadd.f32 %v2312_v3, %v2298_v50 }
 0xf16   : > { %v2319_v12 = vmul.f32 0.7978846, %v2315_v4  ;;  %v2317_v13 = vadd.f32 %v2313_v5, %v2300_v48  ;;  %v2560_v4 = vld [vmem:[%s4032_s3] sm:$0xff] (!%p2847_p7)  ;;  %v2562_v5 = vld [vmem:[%s4032_s3 + $0x10] sm:$0xff] (!%p2847_p7) }
 0xf17   : > { %3326 = vtanh.f32 %v2318_v7  ;;  %v2320_v15 = vmul.f32 0.7978846, %v2316_v9  ;;  %v3448_v7 = vmov (!%p2847_p7), 0.0|0.0  }
 0xf18   : > { %3328 = vtanh.f32 %v2319_v12  ;;  %v2321_v29 = vmul.f32 0.7978846, %v2317_v13  ;;  %3099 = vmatprep.subr.bf16.mxu0 (!%p2847_p7), %v3448_v7  ;;  %v3450_v12 = vmov (!%p2847_p7), 0.0  }
 0xf19   : > { %3330 = vtanh.f32 %v2320_v15  ;;  %v2564_v15 = vld [vmem:[%s4032_s3 + $0x20] sm:$0xff] (!%p2847_p7) }
 0xf1a   : > { %3332 = vtanh.f32 %v2321_v29  ;;  %v2565_v29 = vld [vmem:[%s4032_s3 + $0x28] sm:$0xff] (!%p2847_p7) }
 0xf21   : > { %v3327_v18 = vpop.eup %3326 }
 0xf22   : > { %v3329_v19 = vpop.eup %3328  ;;  %v2326_v28 = vadd.f32 1.0, %v3327_v18  ;;  %v3106_v18 = vpack.c.bf16 (!%p2847_p7), %v2565_v29, %v2564_v15 }
 0xf23   : > { %v3331_v20 = vpop.eup %3330  ;;  %v2327_v22 = vadd.f32 1.0, %v3329_v19  ;;  %v2566_v19 = vld [vmem:[%s4032_s3 + $0x30] sm:$0xff] (!%p2847_p7) }
 0xf24   : > { %v3333_v23 = vpop.eup %3332  ;;  %v2330_v16 = vmul.f32 0.5, %v2326_v28  ;;  %v2328_v0 = vadd.f32 1.0, %v3331_v20  ;;  %v2567_v28 = vld [vmem:[%s4032_s3 + $0x38] sm:$0xff] (!%p2847_p7) }
 0xf25   : > { %v2329_v21 = vadd.f32 1.0, %v3333_v23  ;;  %v2331_v24 = vmul.f32 0.5, %v2327_v22  ;;  %v3109_v20 = vpack.c.bf16 (!%p2847_p7), %v2567_v28, %v2566_v19  ;;  %v2568_v22 = vld [vmem:[%s4032_s3 + $0x40] sm:$0xff] (!%p2847_p7)  ;;  %v2569_v23 = vld [vmem:[%s4032_s3 + $0x48] sm:$0xff] (!%p2847_p7) }
 0xf26   : > { %v2332_v25 = vmul.f32 0.5, %v2328_v0  ;;  %v2334_v60 = vmul.f32 %v2330_v16, %v2294_v43  ;;  %v3112_v16 = vpack.c.bf16 (!%p2847_p7), %v2569_v23, %v2568_v22  ;;  %v2570_v0 = vld [vmem:[%s4032_s3 + $0x50] sm:$0xff] (!%p2847_p7) }
 0xf27   : > { %v2333_v26 = vmul.f32 0.5, %v2329_v21  ;;  %v2335_v27 = vmul.f32 %v2331_v24, %v2296_v45  ;;  %v2571_v21 = vld [vmem:[%s4032_s3 + $0x58] sm:$0xff] (!%p2847_p7) }
 0xf28   : > { %v2336_v62 = vmul.f32 %v2332_v25, %v2298_v50  ;;  %v3115_v24 = vpack.c.bf16 (!%p2847_p7), %v2571_v21, %v2570_v0  ;;  %v2572_v25 = vld [vmem:[%s4032_s3 + $0x60] sm:$0xff] (!%p2847_p7) }
 0xf29   : > { %v2337_v30 = vmul.f32 %v2333_v26, %v2300_v48  ;;  %v2573_v26 = vld [vmem:[%s4032_s3 + $0x68] sm:$0xff] (!%p2847_p7) }
 0xf2a   : > { %v2338_v31 = vpack.c.bf16 %v2336_v62, %v2334_v60  ;;  %v3118_v60 = vpack.c.bf16 (!%p2847_p7), %v2573_v26, %v2572_v25  ;;  %v2574_v62 = vld [vmem:[%s4032_s3 + $0x70] sm:$0xff] (!%p2847_p7) }
 0xf2b   : > { %v2339_v10 = vpack.c.bf16 %v2337_v30, %v2335_v27  ;;  %v2575_v27 = vld [vmem:[%s4032_s3 + $0x78] sm:$0xff] (!%p2847_p7) }
 0xf2c   : > { %v3121_v30 = vpack.c.bf16 (!%p2847_p7), %v2575_v27, %v2574_v62 }
 0xf2d   : > { %2504 = vmatprep.mubr.bf16.mxu0 %v2339_v10 }
 0xf2e   : > { %2505 = vmatmul.mubr.bf16.vlgmr.msra.gmra.mrb[16].mxu0 %v2338_v31 }
 0xf2f   : > { %3096 = vmatprep.mubr.msk.f32.mxu0 (!%p2847_p7), %vm3449_vm5, %v3450_v12 }
0x1001   : > { %v2921_v8 = vpop.f32.mrb[16].mxu0 }
0x1002   : > { %v2922_v33 = vpop.f32.mrb[17].mxu0 }
0x1003   : > { %v2923_v34 = vadd.f32 %v2922_v33, %v2921_v8  ;;  %v2924_v37 = vpop.f32.mrb[18].mxu0 }
0x1004   : > { %v2925_v35 = vpop.f32.mrb[19].mxu0 }
0x1005   : > { %v2507_v36 = vadd.f32 %v2923_v34, %v2375_v32  ;;  %v2926_v38 = vadd.f32 %v2925_v35, %v2924_v37 }
0x1007   : > { %v2510_v39 = vadd.f32 %v2926_v38, %v2375_v32  ;;  %v2513_v40 = vadd.f32 %v2507_v36, %v3905_v17 }
0x1009   : > { %2515 = vadd.xlane.f32.xlu1 %v2513_v40  ;;  %v2514_v41 = vadd.f32 %v2510_v39, %v3907_v58  ;;  %v3338_v58 = vld [vmem:[%s3599_s19 + $0x8] sm:$0x7] }
0x100a   : > { %v2540_v52 = vrot.slane %v3338_v58, %v3664_v57  ;;  %v2561_v57 = vld [vmem:[%s4032_s3 + $0x8] sm:$0xff] (!%p2847_p7) }
0x100b   : > { %2517 = vadd.xlane.f32.xlu0 %v2514_v41  ;;  %v3100_v9 = vpack.c.bf16 (!%p2847_p7), %v2561_v57, %v2560_v4 }
0x100d   : > { %3101 = vmatpush3.bf16.msra.mxu0 (!%p2847_p7), %v3100_v9 }
0x100e   : > { %3102 = vmatprep.subr.bf16.mxu0 (!%p2847_p7), %v3448_v7 }
0x1096   : > { %v2516_v42 = vpop.xlane.xlu1 %2515 }
0x1097   : > { %v2519_v43 = vmul.f32 0.0078125, %v2516_v42 }
0x1098   : > { %v2518_v44 = vpop.xlane.xlu0 %2517 }
0x1099   : > { %v2521_v56 = vsub.f32 %v2513_v40, %v2519_v43  ;;  %v2520_v45 = vmul.f32 0.0078125, %v2518_v44 }
0x109b   : > { %v2522_v59 = vsub.f32 %v2514_v41, %v2520_v45  ;;  %v2523_v46 = vmul.f32 %v2521_v56, %v2521_v56 }
0x109d   : > { %2525 = vadd.xlane.f32.xlu1 %v2523_v46  ;;  %v2524_v49 = vmul.f32 %v2522_v59, %v2522_v59 }
0x109f   : > { %2527 = vadd.xlane.f32.xlu0 %v2524_v49 }
0x112a   : > { %v2526_v50 = vpop.xlane.xlu1 %2525 }
0x112b   : > { %v2529_v11 = vmul.f32 0.0078125, %v2526_v50 }
0x112c   : > { %v2528_v47 = vpop.xlane.xlu0 %2527 }
0x112d   : > { %v2531_v48 = vadd.f32 1e-12, %v2529_v11  ;;  %v2530_v17 = vmul.f32 0.0078125, %v2528_v47 }
0x112f   : > { %3334 = vrsqrt.f32 %v2531_v48  ;;  %v2532_v51 = vadd.f32 1e-12, %v2530_v17 }
0x1131   : > { %3336 = vrsqrt.f32 %v2532_v51 }
0x1139   : > { %v3335_v53 = vpop.eup %3334 }
0x113a   : > { %v2535_v14 = vmul.f32 %v3335_v53, %v2521_v56 }
0x113b   : > { %v3337_v54 = vpop.eup %3336 }
0x113c   : > { %v2541_v55 = vmul.f32 %v2540_v52, %v2535_v14  ;;  %v2536_v63 = vmul.f32 %v3337_v54, %v2522_v59  ;;  %2554 = sbr.rel (%p2847_p7) target bundleno = 4975 (0x136f), region = 64 }
0x113e   : > { %v2547_v1 = vadd.f32 %v3674_v61, %v2541_v55  ;;  %v2542_v2 = vmul.f32 %v2540_v52, %v2536_v63 }
0x1140   : > { %2549 = vst [vmem:[#allocation2] sm:$0xff] %v2547_v1  ;;  %v2548_v3 = vadd.f32 %v3674_v61, %v2542_v2  ;;  %v2563_v61 = vld [vmem:[%s4032_s3 + $0x18] sm:$0xff] (!%p2847_p7) }
0x1141   : > { %v3103_v13 = vpack.c.bf16 (!%p2847_p7), %v2563_v61, %v2562_v5 }
0x1142   : > { %2550 = vst [vmem:[#allocation2 + $0x8] sm:$0xff] %v2548_v3  ;;  %v2556_v31 = vrot.slane (!%p2847_p7), %v2548_v3, 7 }
0x1143   : > { %3104 = vmatpush3.bf16.msra.mxu0 %v3103_v13 }
0x1144   : > { %3105 = vmatprep.subr.bf16.mxu0 %v3448_v7  ;;  %v2559_v10 = vsel %vm2558_vm6, %v2547_v1, %v2556_v31 }
0x1147   : > { %3107 = vmatpush3.bf16.msra.mxu0 %v3106_v18 }
0x1148   : > { %3108 = vmatprep.subr.bf16.mxu0 %v3448_v7 }
0x114b   : > { %3110 = vmatpush3.bf16.msra.mxu0 %v3109_v20 }
0x114c   : > { %3111 = vmatprep.subr.bf16.mxu0 %v3448_v7 }
0x114f   : > { %3113 = vmatpush3.bf16.msra.mxu0 %v3112_v16 }
0x1150   : > { %3114 = vmatprep.subr.bf16.mxu0 %v3448_v7 }
0x1153   : > { %3116 = vmatpush3.bf16.msra.mxu0 %v3115_v24 }
0x1154   : > { %3117 = vmatprep.subr.bf16.mxu0 %v3448_v7 }
0x1157   : > { %3119 = vmatpush3.bf16.msra.mxu0 %v3118_v60 }
0x1158   : > { %3120 = vmatprep.subr.bf16.mxu0 %v3448_v7 }
0x115b   : > { %3122 = vmatpush3.bf16.msra.mxu0 %v3121_v30 }
0x115e   : > { %3097 = vmatmul.mubr.f32.vlgmr.msra.gmra.mrb[0].mxu0 %v2559_v10 }
0x1231   : > { %v2649_v8 = vpop.f32.mrb[0].mxu0 }
0x1232   : > { %v2650_v32 = vadd.f32 %v2848_v6, %v2649_v8  ;;  %v3098_v33 = vpop.f32.mrb[1].mxu0 }
0x1234   : > { %v2654_v34 = vsel %vm2653_vm7, %v2650_v32, -inf }
0x1235   : > { %2655 = vmax.xlane.f32.xlu0 %v2654_v34 }
0x12c2   : > { %v2656_v37 = vpop.xlane.xlu0 %2655 }
0x12c3   : > { %v2657_v35 = vsub.f32 %v2650_v32, %v2656_v37 }
0x12c5   : > { %v2658_v36 = vmul.f32 1.442695, %v2657_v35 }
0x12c7   : > { %3339 = vpow2.f32 %v2658_v36 }
0x12d1   : > { %v3340_v38 = vpop.eup %3339 }
0x12d2   : > { %v2660_v39 = vsel %vm2653_vm7, %v3340_v38, 0.0 }
0x12d3   : > { %2661 = vadd.xlane.f32.xlu0 %v2660_v39 }
0x1360   : > { %v2662_v40 = vpop.xlane.xlu0 %2661 }
0x1361   : > { %3341 = vrcp.f32 %v2662_v40 }
0x136b   : > { %v3342_v41 = vpop.eup %3341 }
0x136c   : > { %v2664_v42 = vmul.f32 %v3342_v41, %v3340_v38 }
0x136e   : > { %2665 = vst.msk [vmem:[#allocation6] sm:$0x3] %vm2653_vm7, %v2664_v42 }
0x136f PF: > { %p3137_p4 = scmp.eq.s32.totalorder %s3516_s9, 1  ;;  %s3451_s12 = smov [#allocation6]  }
0x1370   : > { %s2673_s16 = sshll.u32 %s3451_s12, 4  ;;  %s2674_s16 = int_to_ptr.vmem [resolvable:$true] %s2673_s16 }
0x1371   : > { %s3373_s17 = scalar_lea.vmem %s2674_s16, 32  ;;  %p3380_p12 = scmp.lt.s32.totalorder %s2674_s16, %s2674_s16 }
0x1372   : > { %p3374_p5 = scmp.ne.s32.totalorder %s2674_s16, %s3373_s17  ;;  %p3381_p0 = scmp.lt.s32.totalorder %s3373_s17, %s3373_s17 }
0x1374   : > { %p3375_p6 = pnand %p3374_p5, %p3137_p4  ;;  %p3382_p1 = por %p3381_p0, %p3380_p12 }
0x1376   : > { %p3376_p10 = pneg %p3375_p6 }
0x1378   : > { %p3383_p2 = pnand %p3382_p1, %p3376_p10 }
0x137a   : > { %3386 = shalt.err (!%p3383_p2)
}
0x137b   : > { %s3387_s20 = scalar_lea.hbm %s4037_s8, 32 }
0x137c   : > { %p3388_p11 = scmp.ne.s32.totalorder %s4037_s8, %s3387_s20  ;;  %p3393_p9 = scmp.lt.u32.totalorder %s3387_s20, %s4037_s8 }
0x137e   : > { %p3389_p13 = pnand %p3388_p11, %p3137_p4 }
0x1380   : > { %p3390_p3 = pneg %p3389_p13 }
0x1382   : > { %p3395_p8 = pnand %p3393_p9, %p3390_p3 }
0x1384   : > { %3398 = shalt.err (!%p3395_p8)
}
0x1385   : > { %3129 = dma.vmem_to_hbm [thread:$0]  (%p3137_p4), %s2674_s16, 32, %s4037_s8, [#allocation5]  }
0x1386   : > { %3420 = dma.done.wait (%p3137_p4), [#allocation5], 32  }
0x1387   : > { %3422 = vsyncadd (%p3137_p4), [#allocation5], 4294967264 }
0x1388 PF: > { %p19_p7 = scmp.ge.s32.totalorder %s3519_s10, 4   ;;  %s4041_s27 = smov %s3429_s28 }
0x1389   : > { %s4042_s28 = smov %s3433_s29  ;;  %s4043_s29 = smov %s3529_s13 }
0x138a   : > { %s4044_s30 = smov %s3519_s10  ;;  %21 = sbr.rel (!%p19_p7) target bundleno = 4 (0x4), region = 103 }
0x1391   :  { %2686 = vsyncpa [#allocation4], 1 }
0x1392   :  { %2688 = vsyncpa [#allocation4 + $0x1], 1 }
0x1393   :  { %2689 = vsyncpa [#allocation5], 1 }
0x1394   :  { %2691 = vsyncpa [#allocation5 + $0x1], 1 }

</bundles_post_ra>
